<compile_context>
chip_gen: v6e
topology: v6e:2x2x1
jax: 0.10.0
libtpu: 0.0.40
codegen_flags: <defaults>
</compile_context>

<pallas_src>
import functools

import jax
import jax.numpy as jnp
from jax.experimental import pallas as pl
from jax.experimental.pallas import tpu as pltpu


def _round_up(x, m):
    return ((x + m - 1) // m) * m


def _dqn_kernel(x_ref, w1_ref, b1_ref, w2_ref, b2_ref, w3_ref, b3_ref, o_ref):
    # bf16 MXU operands, f32 accumulation; bias-add / ReLU in f32.
    h1 = jnp.dot(x_ref[...], w1_ref[...], preferred_element_type=jnp.float32)
    h1 = jnp.maximum(h1 + b1_ref[...], 0.0).astype(x_ref.dtype)   # -> bf16 for next dot

    h2 = jnp.dot(h1, w2_ref[...], preferred_element_type=jnp.float32)
    h2 = jnp.maximum(h2 + b2_ref[...], 0.0).astype(x_ref.dtype)   # -> bf16 for next dot

    out = jnp.dot(h2, w3_ref[...], preferred_element_type=jnp.float32)
    o_ref[...] = (out + b3_ref[...]).astype(o_ref.dtype)          # bf16 store


def prepare_dqn_params(w1, b1, w2, b2, w3, b3):
    """One-time parameter preprocessing (hoisted out of the forward hot path).

    Pads the final output dim (action_dim) up to a multiple of 128 so the
    kernel's output stores are lane-dense, casts weights to bf16 (MXU operands)
    and biases to f32 (accumulator dtype). Returns (params_tuple, action_dim).
    """
    action_dim = w3.shape[1]
    n_pad = _round_up(action_dim, 128)
    if n_pad != action_dim:
        w3 = jnp.pad(w3, ((0, 0), (0, n_pad - action_dim)))
        b3 = jnp.pad(b3, ((0, 0), (0, n_pad - action_dim)))
    params = (
        w1.astype(jnp.bfloat16), b1.astype(jnp.float32),
        w2.astype(jnp.bfloat16), b2.astype(jnp.float32),
        w3.astype(jnp.bfloat16), b3.astype(jnp.float32),
    )
    return params, action_dim


def _pick_batch_tile(batch, block_b):
    """Batch tile: multiple of 16 (bf16 sublanes), <= block_b, and >= 2 grid
    steps whenever the batch allows it (so v7x can shard across its 2 TCs)."""
    block_b = max(16, _round_up(block_b, 16))      # sanitize user block_b
    b16 = _round_up(max(batch, 1), 16)
    tb = min(block_b, b16)
    if b16 // tb < 2 and b16 >= 32:                # prefer >= 2 grid steps
        tb = _round_up(b16 // 2, 16)
    b_pad = _round_up(b16, tb)
    return tb, b_pad


@functools.partial(
    jax.jit, static_argnames=("action_dim", "block_b", "single_buffer_weights")
)
def _dqn_forward_impl(x, w1, b1, w2, b2, w3, b3, *, action_dim, block_b,
                      single_buffer_weights):
    B, state_dim = x.shape
    hidden = w1.shape[1]
    n_pad = w3.shape[1]                            # already padded to 128

    tb, b_pad = _pick_batch_tile(B, block_b)
    if b_pad != B:
        x = jnp.pad(x, ((0, b_pad - B), (0, 0)))
    xb = x.astype(jnp.bfloat16)

    grid = (b_pad // tb,)

    # Weights/biases: constant block index across the batch grid -> DMA'd once
    # and stay VMEM-resident. Single-buffer them (a 2nd buffer is wasted VMEM).
    if single_buffer_weights:
        resident = lambda arr: pl.BlockSpec(
            arr.shape, lambda i: (0,) * arr.ndim, pipeline_mode=pl.Buffered(1))
    else:
        resident = lambda arr: pl.BlockSpec(arr.shape, lambda i: (0,) * arr.ndim)

    in_specs = [
        pl.BlockSpec((tb, state_dim), lambda i: (i, 0)),   # x tile (pipelined)
        resident(w1), resident(b1),
        resident(w2), resident(b2),
        resident(w3), resident(b3),
    ]
    out_specs = pl.BlockSpec((tb, n_pad), lambda i: (i, 0))

    flops = 2 * b_pad * (state_dim * hidden + hidden * hidden + hidden * n_pad)
    bytes_accessed = (
        b_pad * state_dim * 2                                          # x (bf16)
        + (state_dim * hidden + hidden * hidden + hidden * n_pad) * 2  # weights (bf16)
        + (2 * hidden + n_pad) * 4                                     # biases (f32)
        + b_pad * n_pad * 2                                            # output (bf16)
    )

    out = pl.pallas_call(
        _dqn_kernel,
        out_shape=jax.ShapeDtypeStruct((b_pad, n_pad), jnp.bfloat16),
        grid=grid,
        in_specs=in_specs,
        out_specs=out_specs,
        compiler_params=pltpu.CompilerParams(
            dimension_semantics=("parallel",),
        ),
        cost_estimate=pl.CostEstimate(
            flops=flops, transcendentals=0, bytes_accessed=bytes_accessed
        ),
    )(xb, w1, b1, w2, b2, w3, b3)

    # Strip batch/lane padding; hand back f32 Q-values (tiny [B, action_dim]).
    return out[:B, :action_dim].astype(jnp.float32)


def dqn_forward(x, params, action_dim, *, block_b=256):
    """x: [B, state_dim] f32; params from prepare_dqn_params -> f32 [B, action_dim]."""
    try:
        return _dqn_forward_impl(x, *params, action_dim=action_dim,
                                 block_b=block_b, single_buffer_weights=True)
    except Exception:
        # Fallback if this jax version rejects pl.Buffered(1) on a pallas_call
        # BlockSpec: keep default double-buffering (negligible VMEM at hidden=256).
        return _dqn_forward_impl(x, *params, action_dim=action_dim,
                                 block_b=block_b, single_buffer_weights=False)


def init_dqn_params(key, state_dim, action_dim, hidden_dim=256, dtype=jnp.float32):
    """PyTorch-style init U(-1/sqrt(fan_in), 1/sqrt(fan_in)).

    Weights returned already transposed to [in, out]; biases as [1, out].
    """
    def linear(key, fan_in, fan_out):
        kw, kb = jax.random.split(key)
        bound = 1.0 / jnp.sqrt(jnp.asarray(fan_in, dtype))
        w = jax.random.uniform(kw, (fan_in, fan_out), dtype, -bound, bound)
        b = jax.random.uniform(kb, (1, fan_out), dtype, -bound, bound)
        return w, b

    k1, k2, k3 = jax.random.split(key, 3)
    w1, b1 = linear(k1, state_dim, hidden_dim)
    w2, b2 = linear(k2, hidden_dim, hidden_dim)
    w3, b3 = linear(k3, hidden_dim, action_dim)
    return w1, b1, w2, b2, w3, b3


def dqn_reference(x, w1, b1, w2, b2, w3, b3):
    """Mirrors kernel numerics: bf16 matmul inputs, f32 accumulation/elementwise."""
    bf = jnp.bfloat16
    f32 = jnp.float32
    h1 = jnp.maximum(
        jnp.dot(x.astype(bf), w1.astype(bf), preferred_element_type=f32) + b1, 0.0)
    h2 = jnp.maximum(
        jnp.dot(h1.astype(bf), w2.astype(bf), preferred_element_type=f32) + b2, 0.0)
    return jnp.dot(h2.astype(bf), w3.astype(bf), preferred_element_type=f32) + b3


if __name__ == "__main__":
    # Shapes consistent with DQN(state_dim, action_dim, hidden_dim=256); batch of
    # 256 actually exercises the batch grid axis (>=2 tiles) and the MXU rows.
    batch, state_dim, action_dim, hidden_dim = 256, 16, 4, 256

    key = jax.random.PRNGKey(0)
    kx, kp = jax.random.split(key)
    x = jax.random.normal(kx, (batch, state_dim), jnp.float32)
    raw_params = init_dqn_params(kp, state_dim, action_dim, hidden_dim)

    # Hoisted one-time preprocessing (pad action dim, cast weights to bf16).
    params, act_dim = prepare_dqn_params(*raw_params)

    out = dqn_forward(x, params, act_dim)
    out = jax.block_until_ready(out)

    ref = dqn_reference(x, *raw_params)
    assert out.shape == (batch, action_dim), out.shape
    max_err = jnp.max(jnp.abs(out - ref))
    assert jnp.allclose(out, ref, atol=2e-2, rtol=2e-2), f"max abs err = {max_err}"

    print("KERNEL_OK")
</pallas_src>

<mosaic_0001>
module attributes {stable_mosaic.version = 11 : i64} {
  func.func @_dqn_kernel(%arg0: i32, %arg1: memref<128x16xbf16, #tpu.memory_space<vmem>>, %arg2: memref<16x256xbf16, #tpu.memory_space<vmem>>, %arg3: memref<1x256xf32, #tpu.memory_space<vmem>>, %arg4: memref<256x256xbf16, #tpu.memory_space<vmem>>, %arg5: memref<1x256xf32, #tpu.memory_space<vmem>>, %arg6: memref<256x128xbf16, #tpu.memory_space<vmem>>, %arg7: memref<1x128xf32, #tpu.memory_space<vmem>>, %arg8: memref<128x128xbf16, #tpu.memory_space<vmem>>) attributes {dimension_semantics = [#tpu.dimension_semantics<parallel>], iteration_bounds = array<i64: 2>, scalar_prefetch = 0 : i64, scratch_operands = 0 : i64, tpu.core_type = #tpu.core_type<tc>, window_params = [{transform_indices = @transform_0, window_bounds = array<i64: 128, 16>}, {pipeline_mode = #tpu.pipeline_mode<synchronous>, transform_indices = @transform_1, window_bounds = array<i64: 16, 256>}, {pipeline_mode = #tpu.pipeline_mode<synchronous>, transform_indices = @transform_2, window_bounds = array<i64: 1, 256>}, {pipeline_mode = #tpu.pipeline_mode<synchronous>, transform_indices = @transform_3, window_bounds = array<i64: 256, 256>}, {pipeline_mode = #tpu.pipeline_mode<synchronous>, transform_indices = @transform_4, window_bounds = array<i64: 1, 256>}, {pipeline_mode = #tpu.pipeline_mode<synchronous>, transform_indices = @transform_5, window_bounds = array<i64: 256, 128>}, {pipeline_mode = #tpu.pipeline_mode<synchronous>, transform_indices = @transform_6, window_bounds = array<i64: 1, 128>}, {transform_indices = @transform_7, window_bounds = array<i64: 128, 128>}]} {
    %c0 = arith.constant 0 : index
    %c0_0 = arith.constant 0 : index
    %0 = vector.load %arg1[%c0, %c0_0] : memref<128x16xbf16, #tpu.memory_space<vmem>>, vector<128x16xbf16>
    %c0_1 = arith.constant 0 : index
    %c0_2 = arith.constant 0 : index
    %1 = vector.load %arg2[%c0_1, %c0_2] : memref<16x256xbf16, #tpu.memory_space<vmem>>, vector<16x256xbf16>
    %cst = arith.constant dense<0.000000e+00> : vector<128x256xf32>
    %2 = tpu.matmul %0, %1, %cst {dimension_numbers = #tpu.dot_dimension_numbers<[1], [0], [0], [1], [0, 0, 1, 1], [], []>} : vector<128x16xbf16>, vector<16x256xbf16>, vector<128x256xf32> -> vector<128x256xf32>
    %c0_3 = arith.constant 0 : index
    %c0_4 = arith.constant 0 : index
    %3 = vector.load %arg3[%c0_3, %c0_4] : memref<1x256xf32, #tpu.memory_space<vmem>>, vector<1x256xf32>
    %4 = vector.broadcast %3 : vector<1x256xf32> to vector<128x256xf32>
    %5 = arith.addf %2, %4 : vector<128x256xf32>
    %cst_5 = arith.constant 0.000000e+00 : f32
    %6 = vector.broadcast %cst_5 : f32 to vector<128x256xf32>
    %7 = arith.maximumf %5, %6 : vector<128x256xf32>
    %8 = arith.truncf %7 : vector<128x256xf32> to vector<128x256xbf16>
    %c0_6 = arith.constant 0 : index
    %c0_7 = arith.constant 0 : index
    %9 = vector.load %arg4[%c0_6, %c0_7] : memref<256x256xbf16, #tpu.memory_space<vmem>>, vector<256x256xbf16>
    %cst_8 = arith.constant dense<0.000000e+00> : vector<128x256xf32>
    %10 = tpu.matmul %8, %9, %cst_8 {dimension_numbers = #tpu.dot_dimension_numbers<[1], [0], [0], [1], [0, 0, 1, 1], [], []>} : vector<128x256xbf16>, vector<256x256xbf16>, vector<128x256xf32> -> vector<128x256xf32>
    %c0_9 = arith.constant 0 : index
    %c0_10 = arith.constant 0 : index
    %11 = vector.load %arg5[%c0_9, %c0_10] : memref<1x256xf32, #tpu.memory_space<vmem>>, vector<1x256xf32>
    %12 = vector.broadcast %11 : vector<1x256xf32> to vector<128x256xf32>
    %13 = arith.addf %10, %12 : vector<128x256xf32>
    %cst_11 = arith.constant 0.000000e+00 : f32
    %14 = vector.broadcast %cst_11 : f32 to vector<128x256xf32>
    %15 = arith.maximumf %13, %14 : vector<128x256xf32>
    %16 = arith.truncf %15 : vector<128x256xf32> to vector<128x256xbf16>
    %c0_12 = arith.constant 0 : index
    %c0_13 = arith.constant 0 : index
    %17 = vector.load %arg6[%c0_12, %c0_13] : memref<256x128xbf16, #tpu.memory_space<vmem>>, vector<256x128xbf16>
    %cst_14 = arith.constant dense<0.000000e+00> : vector<128x128xf32>
    %18 = tpu.matmul %16, %17, %cst_14 {dimension_numbers = #tpu.dot_dimension_numbers<[1], [0], [0], [1], [0, 0, 1, 1], [], []>} : vector<128x256xbf16>, vector<256x128xbf16>, vector<128x128xf32> -> vector<128x128xf32>
    %c0_15 = arith.constant 0 : index
    %c0_16 = arith.constant 0 : index
    %19 = vector.load %arg7[%c0_15, %c0_16] : memref<1x128xf32, #tpu.memory_space<vmem>>, vector<1x128xf32>
    %20 = vector.broadcast %19 : vector<1x128xf32> to vector<128x128xf32>
    %21 = arith.addf %18, %20 : vector<128x128xf32>
    %22 = arith.truncf %21 : vector<128x128xf32> to vector<128x128xbf16>
    %c0_17 = arith.constant 0 : index
    %c0_18 = arith.constant 0 : index
    %23 = vector.load %arg8[%c0_17, %c0_18] : memref<128x128xbf16, #tpu.memory_space<vmem>>, vector<128x128xbf16>
    tpu.vector_store %arg8[%c0_17, %c0_18], %22 {strides = array<i32>} : memref<128x128xbf16, #tpu.memory_space<vmem>>, vector<128x128xbf16>,
    return
  }
  func.func @transform_0(%arg0: i32) -> (i32, i32) {
    %c0_i32 = arith.constant 0 : i32
    %c0_i32_0 = arith.constant 0 : i32
    return %arg0, %c0_i32 : i32, i32
  }
  func.func @transform_1(%arg0: i32) -> (i32, i32) {
    %c0_i32 = arith.constant 0 : i32
    %c0_i32_0 = arith.constant 0 : i32
    %c0_i32_1 = arith.constant 0 : i32
    return %c0_i32, %c0_i32_0 : i32, i32
  }
  func.func @transform_2(%arg0: i32) -> (i32, i32) {
    %c0_i32 = arith.constant 0 : i32
    %c0_i32_0 = arith.constant 0 : i32
    %c0_i32_1 = arith.constant 0 : i32
    return %c0_i32, %c0_i32_0 : i32, i32
  }
  func.func @transform_3(%arg0: i32) -> (i32, i32) {
    %c0_i32 = arith.constant 0 : i32
    %c0_i32_0 = arith.constant 0 : i32
    %c0_i32_1 = arith.constant 0 : i32
    return %c0_i32, %c0_i32_0 : i32, i32
  }
  func.func @transform_4(%arg0: i32) -> (i32, i32) {
    %c0_i32 = arith.constant 0 : i32
    %c0_i32_0 = arith.constant 0 : i32
    %c0_i32_1 = arith.constant 0 : i32
    return %c0_i32, %c0_i32_0 : i32, i32
  }
  func.func @transform_5(%arg0: i32) -> (i32, i32) {
    %c0_i32 = arith.constant 0 : i32
    %c0_i32_0 = arith.constant 0 : i32
    %c0_i32_1 = arith.constant 0 : i32
    return %c0_i32, %c0_i32_0 : i32, i32
  }
  func.func @transform_6(%arg0: i32) -> (i32, i32) {
    %c0_i32 = arith.constant 0 : i32
    %c0_i32_0 = arith.constant 0 : i32
    %c0_i32_1 = arith.constant 0 : i32
    return %c0_i32, %c0_i32_0 : i32, i32
  }
  func.func @transform_7(%arg0: i32) -> (i32, i32) {
    %c0_i32 = arith.constant 0 : i32
    %c0_i32_0 = arith.constant 0 : i32
    return %arg0, %c0_i32 : i32, i32
  }
}

module attributes {stable_mosaic.version = 11 : i64} {
  func.func @_dqn_kernel(%arg0: i32, %arg1: memref<128x16xbf16, #tpu.memory_space<vmem>>, %arg2: memref<16x256xbf16, #tpu.memory_space<vmem>>, %arg3: memref<1x256xf32, #tpu.memory_space<vmem>>, %arg4: memref<256x256xbf16, #tpu.memory_space<vmem>>, %arg5: memref<1x256xf32, #tpu.memory_space<vmem>>, %arg6: memref<256x128xbf16, #tpu.memory_space<vmem>>, %arg7: memref<1x128xf32, #tpu.memory_space<vmem>>, %arg8: memref<128x128xbf16, #tpu.memory_space<vmem>>) attributes {dimension_semantics = [#tpu.dimension_semantics<parallel>], iteration_bounds = array<i64: 2>, scalar_prefetch = 0 : i64, scratch_operands = 0 : i64, tpu.core_type = #tpu.core_type<tc>, window_params = [{transform_indices = @transform_0, window_bounds = array<i64: 128, 16>}, {pipeline_mode = #tpu.pipeline_mode<synchronous>, transform_indices = @transform_1, window_bounds = array<i64: 16, 256>}, {pipeline_mode = #tpu.pipeline_mode<synchronous>, transform_indices = @transform_2, window_bounds = array<i64: 1, 256>}, {pipeline_mode = #tpu.pipeline_mode<synchronous>, transform_indices = @transform_3, window_bounds = array<i64: 256, 256>}, {pipeline_mode = #tpu.pipeline_mode<synchronous>, transform_indices = @transform_4, window_bounds = array<i64: 1, 256>}, {pipeline_mode = #tpu.pipeline_mode<synchronous>, transform_indices = @transform_5, window_bounds = array<i64: 256, 128>}, {pipeline_mode = #tpu.pipeline_mode<synchronous>, transform_indices = @transform_6, window_bounds = array<i64: 1, 128>}, {transform_indices = @transform_7, window_bounds = array<i64: 128, 128>}]} {
    %c0 = arith.constant 0 : index
    %c0_0 = arith.constant 0 : index
    %0 = vector.load %arg1[%c0, %c0_0] : memref<128x16xbf16, #tpu.memory_space<vmem>>, vector<128x16xbf16>
    %c0_1 = arith.constant 0 : index
    %c0_2 = arith.constant 0 : index
    %1 = vector.load %arg2[%c0_1, %c0_2] : memref<16x256xbf16, #tpu.memory_space<vmem>>, vector<16x256xbf16>
    %cst = arith.constant dense<0.000000e+00> : vector<128x256xf32>
    %2 = tpu.matmul %0, %1, %cst {dimension_numbers = #tpu.dot_dimension_numbers<[1], [0], [0], [1], [0, 0, 1, 1], [], []>} : vector<128x16xbf16>, vector<16x256xbf16>, vector<128x256xf32> -> vector<128x256xf32>
    %c0_3 = arith.constant 0 : index
    %c0_4 = arith.constant 0 : index
    %3 = vector.load %arg3[%c0_3, %c0_4] : memref<1x256xf32, #tpu.memory_space<vmem>>, vector<1x256xf32>
    %4 = vector.broadcast %3 : vector<1x256xf32> to vector<128x256xf32>
    %5 = arith.addf %2, %4 : vector<128x256xf32>
    %cst_5 = arith.constant 0.000000e+00 : f32
    %6 = vector.broadcast %cst_5 : f32 to vector<128x256xf32>
    %7 = arith.maximumf %5, %6 : vector<128x256xf32>
    %8 = arith.truncf %7 : vector<128x256xf32> to vector<128x256xbf16>
    %c0_6 = arith.constant 0 : index
    %c0_7 = arith.constant 0 : index
    %9 = vector.load %arg4[%c0_6, %c0_7] : memref<256x256xbf16, #tpu.memory_space<vmem>>, vector<256x256xbf16>
    %cst_8 = arith.constant dense<0.000000e+00> : vector<128x256xf32>
    %10 = tpu.matmul %8, %9, %cst_8 {dimension_numbers = #tpu.dot_dimension_numbers<[1], [0], [0], [1], [0, 0, 1, 1], [], []>} : vector<128x256xbf16>, vector<256x256xbf16>, vector<128x256xf32> -> vector<128x256xf32>
    %c0_9 = arith.constant 0 : index
    %c0_10 = arith.constant 0 : index
    %11 = vector.load %arg5[%c0_9, %c0_10] : memref<1x256xf32, #tpu.memory_space<vmem>>, vector<1x256xf32>
    %12 = vector.broadcast %11 : vector<1x256xf32> to vector<128x256xf32>
    %13 = arith.addf %10, %12 : vector<128x256xf32>
    %cst_11 = arith.constant 0.000000e+00 : f32
    %14 = vector.broadcast %cst_11 : f32 to vector<128x256xf32>
    %15 = arith.maximumf %13, %14 : vector<128x256xf32>
    %16 = arith.truncf %15 : vector<128x256xf32> to vector<128x256xbf16>
    %c0_12 = arith.constant 0 : index
    %c0_13 = arith.constant 0 : index
    %17 = vector.load %arg6[%c0_12, %c0_13] : memref<256x128xbf16, #tpu.memory_space<vmem>>, vector<256x128xbf16>
    %cst_14 = arith.constant dense<0.000000e+00> : vector<128x128xf32>
    %18 = tpu.matmul %16, %17, %cst_14 {dimension_numbers = #tpu.dot_dimension_numbers<[1], [0], [0], [1], [0, 0, 1, 1], [], []>} : vector<128x256xbf16>, vector<256x128xbf16>, vector<128x128xf32> -> vector<128x128xf32>
    %c0_15 = arith.constant 0 : index
    %c0_16 = arith.constant 0 : index
    %19 = vector.load %arg7[%c0_15, %c0_16] : memref<1x128xf32, #tpu.memory_space<vmem>>, vector<1x128xf32>
    %20 = vector.broadcast %19 : vector<1x128xf32> to vector<128x128xf32>
    %21 = arith.addf %18, %20 : vector<128x128xf32>
    %22 = arith.truncf %21 : vector<128x128xf32> to vector<128x128xbf16>
    %c0_17 = arith.constant 0 : index
    %c0_18 = arith.constant 0 : index
    %23 = vector.load %arg8[%c0_17, %c0_18] : memref<128x128xbf16, #tpu.memory_space<vmem>>, vector<128x128xbf16>
    tpu.vector_store %arg8[%c0_17, %c0_18], %22 {strides = array<i32>} : memref<128x128xbf16, #tpu.memory_space<vmem>>, vector<128x128xbf16>,
    return
  }
  func.func @transform_0(%arg0: i32) -> (i32, i32) {
    %c0_i32 = arith.constant 0 : i32
    %c0_i32_0 = arith.constant 0 : i32
    return %arg0, %c0_i32 : i32, i32
  }
  func.func @transform_1(%arg0: i32) -> (i32, i32) {
    %c0_i32 = arith.constant 0 : i32
    %c0_i32_0 = arith.constant 0 : i32
    %c0_i32_1 = arith.constant 0 : i32
    return %c0_i32, %c0_i32_0 : i32, i32
  }
  func.func @transform_2(%arg0: i32) -> (i32, i32) {
    %c0_i32 = arith.constant 0 : i32
    %c0_i32_0 = arith.constant 0 : i32
    %c0_i32_1 = arith.constant 0 : i32
    return %c0_i32, %c0_i32_0 : i32, i32
  }
  func.func @transform_3(%arg0: i32) -> (i32, i32) {
    %c0_i32 = arith.constant 0 : i32
    %c0_i32_0 = arith.constant 0 : i32
    %c0_i32_1 = arith.constant 0 : i32
    return %c0_i32, %c0_i32_0 : i32, i32
  }
  func.func @transform_4(%arg0: i32) -> (i32, i32) {
    %c0_i32 = arith.constant 0 : i32
    %c0_i32_0 = arith.constant 0 : i32
    %c0_i32_1 = arith.constant 0 : i32
    return %c0_i32, %c0_i32_0 : i32, i32
  }
  func.func @transform_5(%arg0: i32) -> (i32, i32) {
    %c0_i32 = arith.constant 0 : i32
    %c0_i32_0 = arith.constant 0 : i32
    %c0_i32_1 = arith.constant 0 : i32
    return %c0_i32, %c0_i32_0 : i32, i32
  }
  func.func @transform_6(%arg0: i32) -> (i32, i32) {
    %c0_i32 = arith.constant 0 : i32
    %c0_i32_0 = arith.constant 0 : i32
    %c0_i32_1 = arith.constant 0 : i32
    return %c0_i32, %c0_i32_0 : i32, i32
  }
  func.func @transform_7(%arg0: i32) -> (i32, i32) {
    %c0_i32 = arith.constant 0 : i32
    %c0_i32_0 = arith.constant 0 : i32
    return %arg0, %c0_i32 : i32, i32
  }
}

</mosaic_0001>

<bundles_post_ra>
// kernel: _dqn_forward_impl.1
= control target key start
LH: loop header
LB: loop body
LE: loop exit
PB: predicated region body
PF: predicated region fallthrough
CT: control target
= control target key end

     0   :  { %12 = vsyncpa [#allocation3], 0  ;;  %s1711_s24 = smov 0   ;;  %s1957_s0 = inlined_call_operand.vmem [shape: bf16[256,16], index: 0, kind: input, shape index: {}]   ;;  %s1958_s1 = inlined_call_operand.vmem [shape: bf16[16,256], index: 1, kind: input, shape index: {}]   ;;  %s1959_s2 = inlined_call_operand.vmem [shape: f32[1,256], index: 2, kind: input, shape index: {}]   ;;  %s1960_s3 = inlined_call_operand.hbm [shape: bf16[256,256], index: 3, kind: input, shape index: {}]   ;;  %s1961_s4 = inlined_call_operand.vmem [shape: f32[1,256], index: 4, kind: input, shape index: {}]   ;;  %s1962_s5 = inlined_call_operand.vmem [shape: bf16[256,128], index: 5, kind: input, shape index: {}]   ;;  %s1963_s6 = inlined_call_operand.vmem [shape: f32[1,128], index: 6, kind: input, shape index: {}]   ;;  %s1964_s7 = inlined_call_operand.vmem [shape: bf16[256,128], index: 7, kind: output, shape index: {}]  }
   0x1 LB: > { %s1309_s25 = sadd.s32 4294967295, %s1665_s24   ;;  %p1311_p0 = scmp.ge.s32.totalorder %s1665_s24, 1  ;;  %s1665_s24 = sphi %s1711_s24, %s18_s24  }
   0x2   : > { %p201_p1 = scmp.lt.s32.totalorder %s1665_s24, 3  ;;  %s1667_s26 = smov [#allocation2]  }
   0x3   : > { %s219_s27 = sshll.u32 %s1667_s26, 4  ;;  %p1723_p3 = scmp.eq.s32.totalorder %s1309_s25, 0  ;;  %s220_s27 = int_to_ptr.vmem [resolvable:$true] %s219_s27 }
   0x4   : > { %p1719_p2 = pnand %p1311_p0, %p201_p1  ;;  %s1640_s30 = scalar_lea.vmem %s220_s27, 4096 }
   0x5   : > { %p1641_p7 = scmp.ne.s32.totalorder %s220_s27, %s1640_s30  ;;  %p1648_p10 = scmp.lt.s32.totalorder %s220_s27, %s220_s27 }
   0x6   : > { %p1536_p4 = pneg %p1719_p2  ;;  %p1649_p11 = scmp.lt.s32.totalorder %s1640_s30, %s1640_s30 }
   0x8   : > { %p1537_p5 = pnand %p1723_p3, %p1536_p4  ;;  %p1650_p12 = por %p1649_p11, %p1648_p10 }
   0xa   : > { %p1631_p6 = pneg %p1537_p5 }
   0xc   : > { %p1643_p8 = pnand %p1641_p7, %p1631_p6 }
   0xe   : > { %p1644_p9 = pneg %p1643_p8 }
  0x10   : > { %p1651_p13 = pnand %p1650_p12, %p1644_p9 }
  0x12   : > { %1654 = shalt.err (!%p1651_p13)
}
  0x13   : > { %s1668_s8 = smov 128   ;;  %s1669_s9 = smov 8  }
  0x14   : > { %1539 = dma.hbm_to_vmem [thread:$0]  (!%p1537_p5), %s1960_s3, 4096, %s220_s27, [#allocation3], %s1668_s8, %s1668_s8, %s1669_s9  }
  0x15   : > { %253 = sbr.rel (%p1719_p2) target bundleno = 708 (0x2c4), region = 48 }
  0x1a   : > { %1660 = dma.done.wait (%p1723_p3), [#allocation3], 4096  }
  0x1b   : > { %1662 = vsyncadd (%p1723_p3), [#allocation3], 4294963200  ;;  %s1316_s12 = sshll.u32 %s1309_s25, 4  ;;  %v1670_v0 = vmov 0   ;;  %v1554_v1 = vld [vmem:[%s1958_s1 + $0x4] ss:$8 sps:$4 sm:$0xff]   ;;  %v318_v57 = vlaneseq }
  0x1c   : > { %435 = vmatprep.mubr.bf16.mxu0 %v1670_v0  ;;  %p286_p0 = scmp.lt.s32.totalorder %s1316_s12, 31  ;;  %v1556_v2 = vld [vmem:[%s1958_s1] ss:$8 sps:$4 sm:$0xff]   ;;  %417 = vmatprep.subr.bf16.mxu0 %v1554_v1  ;;  %vm378_vm0 = vcmask 130048   ;;  %v1565_v5 = vld [vmem:[#allocation2 + $0x74] ss:$8 sps:$4 sm:$0xff]  }
  0x1d   : > { %418 = vmatpush1.bf16.msra.mxu0 %v1556_v2  ;;  %v1567_v6 = vld [vmem:[#allocation2 + $0x70] ss:$8 sps:$4 sm:$0xff]   ;;  %v1568_v7 = vld [vmem:[#allocation2 + $0x64] ss:$8 sps:$4 sm:$0xff]   ;;  %768 = vmatprep.subr.bf16.mxu1 %v1565_v5  ;;  %v1570_v8 = vld [vmem:[#allocation2 + $0x60] ss:$8 sps:$4 sm:$0xff]  }
  0x1e   : > { %s1968_s12 = smov (!%p286_p0, %s1316_s12), 31  ;;  %769 = vmatpush1.bf16.msra.mxu1 %v1567_v6  ;;  %v1571_v9 = vld [vmem:[#allocation2 + $0x54] ss:$8 sps:$4 sm:$0xff]   ;;  %v1573_v10 = vld [vmem:[#allocation2 + $0x50] ss:$8 sps:$4 sm:$0xff]   ;;  %v1617_v47 = vld [vmem:[%s1962_s5 + $0x68] sm:$0xff]  }
  0x1f   : > { %s1317_s13 = sshll.u32 %s1968_s12, 2  ;;  %770 = vmatprep.subr.bf16.mxu1 %v1568_v7  ;;  %v1574_v12 = vld [vmem:[#allocation2 + $0x44] ss:$8 sps:$4 sm:$0xff]   ;;  %v1576_v13 = vld [vmem:[#allocation2 + $0x40] ss:$8 sps:$4 sm:$0xff]   ;;  %v1613_v43 = vld [vmem:[%s1962_s5 + $0x78] sm:$0xff]  }
  0x20   : > { %s1749_s16 = scalar_lea.vmem %s1957_s0, %s1317_s13  ;;  %v1577_v14 = vld [vmem:[#allocation2 + $0x34] ss:$8 sps:$4 sm:$0xff]   ;;  %v1579_v15 = vld [vmem:[#allocation2 + $0x30] ss:$8 sps:$4 sm:$0xff]   ;;  %v1580_v17 = vld [vmem:[#allocation2 + $0x24] ss:$8 sps:$4 sm:$0xff]   ;;  %1468 = vmatprep.subr.bf16.mxu0 %v1613_v43  ;;  %s1930_s21 = scalar_lea.vmem %s1964_s7, %s1317_s13 }
  0x21   : > { %v1557_v3 = vld [vmem:[%s1749_s16] sm:$0xff]   ;;  %v1558_v4 = vld [vmem:[%s1749_s16 + $0x8] sm:$0xff]   ;;  %v1559_v11 = vld [vmem:[%s1749_s16 + $0x10] sm:$0xff]   ;;  %v1822_v58 = vshrl.u32 %v318_v57, 7 }
  0x22   : > { %1330 = vmatmul.mubr.msk.bf16.vlgmr.msra.gmra.mxu0 %vm378_vm0, %v1557_v3  ;;  %771 = vmatpush1.bf16.msra.mxu1 %v1570_v8  ;;  %v1560_v16 = vld [vmem:[%s1749_s16 + $0x18] sm:$0xff]   ;;  %v1582_v18 = vld [vmem:[#allocation2 + $0x20] ss:$8 sps:$4 sm:$0xff]   ;;  %v1586_v22 = vld [vmem:[#allocation2 + $0x4] ss:$8 sps:$4 sm:$0xff]  }
  0x23   : > { %445 = vmatprep.mubr.bf16.mxu0 %v1670_v0  ;;  %772 = vmatprep.subr.bf16.mxu1 %v1571_v9  ;;  %v1583_v19 = vld [vmem:[#allocation2 + $0x14] ss:$8 sps:$4 sm:$0xff]   ;;  %v1585_v20 = vld [vmem:[#allocation2 + $0x10] ss:$8 sps:$4 sm:$0xff]   ;;  %v1561_v21 = vld [vmem:[%s1749_s16 + $0x20] sm:$0xff]   ;;  %v324_v59 = vsub.s32 1, %v1822_v58 }
  0x24   : > { %v1588_v23 = vld [vmem:[#allocation2] ss:$8 sps:$4 sm:$0xff]   ;;  %v1589_v24 = vld [vmem:[#allocation2 + $0xf4] ss:$8 sps:$4 sm:$0xff]   ;;  %v1591_v25 = vld [vmem:[#allocation2 + $0xf0] ss:$8 sps:$4 sm:$0xff]  }
  0x25   : > { %v1562_v26 = vld [vmem:[%s1749_s16 + $0x28] sm:$0xff]   ;;  %v1595_v29 = vld [vmem:[#allocation2 + $0xd4] ss:$8 sps:$4 sm:$0xff]   ;;  %v1597_v30 = vld [vmem:[#allocation2 + $0xd0] ss:$8 sps:$4 sm:$0xff]   ;;  %v320_v60 = vsub.s32 0, %v1822_v58 }
  0x26   : > { %773 = vmatpush1.bf16.msra.mxu1 %v1573_v10  ;;  %v1592_v27 = vld [vmem:[#allocation2 + $0xe4] ss:$8 sps:$4 sm:$0xff]   ;;  %v1594_v28 = vld [vmem:[#allocation2 + $0xe0] ss:$8 sps:$4 sm:$0xff]   ;;  %v1563_v31 = vld [vmem:[%s1749_s16 + $0x30] sm:$0xff]  }
  0x27   : > { %774 = vmatprep.subr.bf16.mxu1 %v1574_v12  ;;  %v1598_v32 = vld [vmem:[#allocation2 + $0xc4] ss:$8 sps:$4 sm:$0xff]   ;;  %v1600_v33 = vld [vmem:[#allocation2 + $0xc0] ss:$8 sps:$4 sm:$0xff]   ;;  %v1601_v34 = vld [vmem:[#allocation2 + $0xb4] ss:$8 sps:$4 sm:$0xff]  }
  0x28   : > { %v1603_v35 = vld [vmem:[#allocation2 + $0xb0] ss:$8 sps:$4 sm:$0xff]   ;;  %v1604_v37 = vld [vmem:[#allocation2 + $0xa4] ss:$8 sps:$4 sm:$0xff]   ;;  %v1606_v38 = vld [vmem:[#allocation2 + $0xa0] ss:$8 sps:$4 sm:$0xff]  }
  0x29   : > { %v1564_v36 = vld [vmem:[%s1749_s16 + $0x38] sm:$0xff]   ;;  %v1610_v41 = vld [vmem:[#allocation2 + $0x84] ss:$8 sps:$4 sm:$0xff]   ;;  %v1612_v42 = vld [vmem:[#allocation2 + $0x80] ss:$8 sps:$4 sm:$0xff]  }
  0x2a   : > { %1331 = vmatmul.mubr.msk.bf16.gmra.mxu0 %vm378_vm0, %v1558_v4  ;;  %775 = vmatpush1.bf16.msra.mxu1 %v1576_v13  ;;  %v1607_v39 = vld [vmem:[#allocation2 + $0x94] ss:$8 sps:$4 sm:$0xff]   ;;  %v1609_v40 = vld [vmem:[#allocation2 + $0x90] ss:$8 sps:$4 sm:$0xff]   ;;  %v1618_v48 = vld [vmem:[%s1962_s5 + $0x28] sm:$0xff]  }
  0x2b   : > { %455 = vmatprep.mubr.bf16.mxu0 %v1670_v0  ;;  %776 = vmatprep.subr.bf16.mxu1 %v1577_v14  ;;  %v1614_v44 = vld [vmem:[%s1962_s5 + $0x38] sm:$0xff]   ;;  %v1615_v45 = vld [vmem:[%s1962_s5 + $0x70] sm:$0xff]   ;;  %v1619_v49 = vld [vmem:[%s1962_s5 + $0x60] sm:$0xff]  }
  0x2c   : > { %1469 = vmatpush3.bf16.msra.mxu0 %v1614_v44  ;;  %v1616_v46 = vld [vmem:[%s1962_s5 + $0x30] sm:$0xff]   ;;  %v1620_v50 = vld [vmem:[%s1962_s5 + $0x20] sm:$0xff]   ;;  %v1621_v51 = vld [vmem:[%s1962_s5 + $0x58] sm:$0xff]  }
  0x2d   : > { %1470 = vmatprep.subr.bf16.mxu0 %v1615_v45  ;;  %v1622_v52 = vld [vmem:[%s1962_s5 + $0x18] sm:$0xff]   ;;  %v1623_v53 = vld [vmem:[%s1962_s5 + $0x50] sm:$0xff]   ;;  %v1625_v55 = vld [vmem:[%s1962_s5 + $0x48] sm:$0xff]  }
  0x2e   : > { %777 = vmatpush1.bf16.msra.mxu1 %v1579_v15  ;;  %v1624_v54 = vld [vmem:[%s1962_s5 + $0x10] sm:$0xff]   ;;  %v1626_v56 = vld [vmem:[%s1962_s5 + $0x8] sm:$0xff]   ;;  %v316_v61 = vld [vmem:[%s1959_s2] sm:$0x3] }
  0x2f   : > { %778 = vmatprep.subr.bf16.mxu1 %v1580_v17  ;;  %v1831_v63 = vrot.slane %v316_v61, %v324_v59 }
  0x30   : > { %1471 = vmatpush3.bf16.msra.mxu0 %v1616_v46 }
  0x31   : > { %1472 = vmatprep.subr.bf16.mxu0 %v1617_v47 }
  0x32   : > { %1332 = vmatmul.mubr.msk.bf16.gmra.mxu0 %vm378_vm0, %v1559_v11  ;;  %779 = vmatpush1.bf16.msra.mxu1 %v1582_v18 }
  0x33   : > { %465 = vmatprep.mubr.bf16.mxu0 %v1670_v0  ;;  %780 = vmatprep.subr.bf16.mxu1 %v1583_v19 }
  0x34   : > { %1473 = vmatpush3.bf16.msra.mxu0 %v1618_v48 }
  0x35   : > { %1474 = vmatprep.subr.bf16.mxu0 %v1619_v49 }
  0x36   : > { %781 = vmatpush1.bf16.msra.mxu1 %v1585_v20 }
  0x37   : > { %782 = vmatprep.subr.bf16.mxu1 %v1586_v22 }
  0x38   : > { %1475 = vmatpush3.bf16.msra.mxu0 %v1620_v50 }
  0x39   : > { %1476 = vmatprep.subr.bf16.mxu0 %v1621_v51 }
  0x3a   : > { %1333 = vmatmul.mubr.msk.bf16.gmra.mxu0 %vm378_vm0, %v1560_v16  ;;  %783 = vmatpush1.bf16.msra.mxu1 %v1588_v23 }
  0x3b   : > { %475 = vmatprep.mubr.bf16.mxu0 %v1670_v0  ;;  %784 = vmatprep.subr.bf16.mxu1 %v1589_v24 }
  0x3c   : > { %1477 = vmatpush3.bf16.msra.mxu0 %v1622_v52 }
  0x3d   : > { %1478 = vmatprep.subr.bf16.mxu0 %v1623_v53 }
  0x3e   : > { %785 = vmatpush2.bf16.msra.mxu1 %v1591_v25 }
  0x3f   : > { %786 = vmatprep.subr.bf16.mxu1 %v1592_v27 }
  0x40   : > { %1479 = vmatpush3.bf16.msra.mxu0 %v1624_v54 }
  0x41   : > { %1480 = vmatprep.subr.bf16.mxu0 %v1625_v55 }
  0x42   : > { %1334 = vmatmul.mubr.msk.bf16.gmra.mxu0 %vm378_vm0, %v1561_v21  ;;  %787 = vmatpush2.bf16.msra.mxu1 %v1594_v28 }
  0x43   : > { %485 = vmatprep.mubr.bf16.mxu0 %v1670_v0  ;;  %788 = vmatprep.subr.bf16.mxu1 %v1595_v29 }
  0x44   : > { %1481 = vmatpush3.bf16.msra.mxu0 %v1626_v56 }
  0x46   : > { %789 = vmatpush2.bf16.msra.mxu1 %v1597_v30 }
  0x47   : > { %790 = vmatprep.subr.bf16.mxu1 %v1598_v32 }
  0x4a   : > { %1335 = vmatmul.mubr.msk.bf16.gmra.mxu0 %vm378_vm0, %v1562_v26  ;;  %791 = vmatpush2.bf16.msra.mxu1 %v1600_v33 }
  0x4b   : > { %495 = vmatprep.mubr.bf16.mxu0 %v1670_v0  ;;  %792 = vmatprep.subr.bf16.mxu1 %v1601_v34 }
  0x4e   : > { %793 = vmatpush2.bf16.msra.mxu1 %v1603_v35 }
  0x4f   : > { %794 = vmatprep.subr.bf16.mxu1 %v1604_v37 }
  0x52   : > { %1336 = vmatmul.mubr.msk.bf16.gmra.mxu0 %vm378_vm0, %v1563_v31  ;;  %795 = vmatpush2.bf16.msra.mxu1 %v1606_v38 }
  0x53   : > { %505 = vmatprep.mubr.bf16.mxu0 %v1670_v0  ;;  %796 = vmatprep.subr.bf16.mxu1 %v1607_v39  ;;  %v1835_v0 = vrot.slane %v316_v61, %v320_v60 }
  0x56   : > { %797 = vmatpush2.bf16.msra.mxu1 %v1609_v40 }
  0x57   : > { %798 = vmatprep.subr.bf16.mxu1 %v1610_v41 }
  0x5a   : > { %1337 = vmatmul.mubr.msk.bf16.gmra.mxu0 %vm378_vm0, %v1564_v36  ;;  %799 = vmatpush2.bf16.msra.mxu1 %v1612_v42 }
  0xe2   : > { %v437_v62 = vpop.f32.mrf.mxu0 }
  0xe3   : > { %v438_v5 = vadd.f32 %v437_v62, %v1835_v0 }
  0xe4   : > { %v439_v1 = vpop.f32.mrf.mxu0 }
  0xe5   : > { %v440_v3 = vadd.f32 %v439_v1, %v1831_v63  ;;  %v516_v12 = vmax.f32 %v438_v5, 0.0 }
  0xe6   : > { %v441_v2 = vpop.f32.mrf.mxu0 }
  0xe7   : > { %v442_v4 = vadd.f32 %v441_v2, %v1835_v0  ;;  %v517_v10 = vmax.f32 %v440_v3, 0.0 }
  0xe8   : > { %v443_v6 = vpop.f32.mrf.mxu0 }
  0xe9   : > { %v444_v7 = vadd.f32 %v443_v6, %v1831_v63  ;;  %v518_v8 = vmax.f32 %v442_v4, 0.0 }
  0xea   : > { %v447_v9 = vpop.f32.mrf.mxu0 }
  0xeb   : > { %v519_v11 = vmax.f32 %v444_v7, 0.0  ;;  %v548_v15 = vpack.c.bf16 %v518_v8, %v516_v12  ;;  %v448_v19 = vadd.f32 %v447_v9, %v1835_v0 }
  0xec   : > { %v449_v13 = vpop.f32.mrf.mxu0 }
  0xed   : > { %v549_v14 = vpack.c.bf16 %v519_v11, %v517_v10  ;;  %v450_v17 = vadd.f32 %v449_v13, %v1831_v63  ;;  %v520_v26 = vmax.f32 %v448_v19, 0.0 }
  0xee   : > { %v451_v16 = vpop.f32.mrf.mxu0 }
  0xef   : > { %v452_v18 = vadd.f32 %v451_v16, %v1835_v0  ;;  %800 = vmatprep.mubr.bf16.mxu1 %v549_v14  ;;  %v521_v24 = vmax.f32 %v450_v17, 0.0 }
  0xf0   : > { %v453_v20 = vpop.f32.mrf.mxu0  ;;  %801 = vmatmul.mubr.bf16.vlgmr.msra.gmra.mxu1 %v548_v15 }
  0xf1   : > { %v454_v21 = vadd.f32 %v453_v20, %v1831_v63  ;;  %v522_v22 = vmax.f32 %v452_v18, 0.0 }
  0xf2   : > { %v457_v23 = vpop.f32.mrf.mxu0 }
  0xf3   : > { %v523_v25 = vmax.f32 %v454_v21, 0.0  ;;  %v550_v29 = vpack.c.bf16 %v522_v22, %v520_v26  ;;  %v458_v33 = vadd.f32 %v457_v23, %v1835_v0 }
  0xf4   : > { %v459_v27 = vpop.f32.mrf.mxu0 }
  0xf5   : > { %v551_v28 = vpack.c.bf16 %v523_v25, %v521_v24  ;;  %v460_v31 = vadd.f32 %v459_v27, %v1831_v63  ;;  %v524_v40 = vmax.f32 %v458_v33, 0.0 }
  0xf6   : > { %v461_v30 = vpop.f32.mrf.mxu0 }
  0xf7   : > { %v462_v32 = vadd.f32 %v461_v30, %v1835_v0  ;;  %810 = vmatprep.mubr.bf16.mxu1 %v551_v28  ;;  %v525_v38 = vmax.f32 %v460_v31, 0.0 }
  0xf8   : > { %v463_v34 = vpop.f32.mrf.mxu0  ;;  %811 = vmatmul.mubr.bf16.gmra.mxu1 %v550_v29 }
  0xf9   : > { %v464_v35 = vadd.f32 %v463_v34, %v1831_v63  ;;  %v526_v36 = vmax.f32 %v462_v32, 0.0 }
  0xfa   : > { %v467_v37 = vpop.f32.mrf.mxu0 }
  0xfb   : > { %v527_v39 = vmax.f32 %v464_v35, 0.0  ;;  %v552_v43 = vpack.c.bf16 %v526_v36, %v524_v40  ;;  %v468_v47 = vadd.f32 %v467_v37, %v1835_v0 }
  0xfc   : > { %v469_v41 = vpop.f32.mrf.mxu0 }
  0xfd   : > { %v553_v42 = vpack.c.bf16 %v527_v39, %v525_v38  ;;  %v470_v45 = vadd.f32 %v469_v41, %v1831_v63  ;;  %v528_v54 = vmax.f32 %v468_v47, 0.0 }
  0xfe   : > { %v471_v44 = vpop.f32.mrf.mxu0 }
  0xff   : > { %v472_v46 = vadd.f32 %v471_v44, %v1835_v0  ;;  %820 = vmatprep.mubr.bf16.mxu1 %v553_v42  ;;  %v529_v52 = vmax.f32 %v470_v45, 0.0 }
 0x100   : > { %v473_v48 = vpop.f32.mrf.mxu0  ;;  %821 = vmatmul.mubr.bf16.gmra.mxu1 %v552_v43 }
 0x101   : > { %v474_v49 = vadd.f32 %v473_v48, %v1831_v63  ;;  %v530_v50 = vmax.f32 %v472_v46, 0.0 }
 0x102   : > { %v477_v51 = vpop.f32.mrf.mxu0 }
 0x103   : > { %v531_v53 = vmax.f32 %v474_v49, 0.0  ;;  %v554_v57 = vpack.c.bf16 %v530_v50, %v528_v54  ;;  %v478_v2 = vadd.f32 %v477_v51, %v1835_v0 }
 0x104   : > { %v479_v55 = vpop.f32.mrf.mxu0 }
 0x105   : > { %v555_v56 = vpack.c.bf16 %v531_v53, %v529_v52  ;;  %v480_v62 = vadd.f32 %v479_v55, %v1831_v63  ;;  %v532_v9 = vmax.f32 %v478_v2, 0.0  ;;  %v1627_v53 = vld [vmem:[%s1962_s5 + $0x40] sm:$0xff]  }
 0x106   : > { %v481_v61 = vpop.f32.mrf.mxu0  ;;  %1482 = vmatprep.subr.bf16.mxu0 %v1627_v53 }
 0x107   : > { %v482_v1 = vadd.f32 %v481_v61, %v1835_v0  ;;  %830 = vmatprep.mubr.bf16.mxu1 %v555_v56  ;;  %v533_v7 = vmax.f32 %v480_v62, 0.0 }
 0x108   : > { %v483_v3 = vpop.f32.mrf.mxu0  ;;  %831 = vmatmul.mubr.bf16.gmra.mxu1 %v554_v57 }
 0x109   : > { %v484_v4 = vadd.f32 %v483_v3, %v1831_v63  ;;  %v534_v5 = vmax.f32 %v482_v1, 0.0 }
 0x10a   : > { %v487_v6 = vpop.f32.mrf.mxu0 }
 0x10b   : > { %v535_v8 = vmax.f32 %v484_v4, 0.0  ;;  %v556_v12 = vpack.c.bf16 %v534_v5, %v532_v9  ;;  %v488_v16 = vadd.f32 %v487_v6, %v1835_v0 }
 0x10c   : > { %v489_v10 = vpop.f32.mrf.mxu0 }
 0x10d   : > { %v557_v11 = vpack.c.bf16 %v535_v8, %v533_v7  ;;  %v490_v14 = vadd.f32 %v489_v10, %v1831_v63  ;;  %v536_v23 = vmax.f32 %v488_v16, 0.0 }
 0x10e   : > { %v491_v13 = vpop.f32.mrf.mxu0 }
 0x10f   : > { %v492_v15 = vadd.f32 %v491_v13, %v1835_v0  ;;  %840 = vmatprep.mubr.bf16.mxu1 %v557_v11  ;;  %v537_v21 = vmax.f32 %v490_v14, 0.0 }
 0x110   : > { %v493_v17 = vpop.f32.mrf.mxu0  ;;  %841 = vmatmul.mubr.bf16.gmra.mxu1 %v556_v12 }
 0x111   : > { %v494_v18 = vadd.f32 %v493_v17, %v1831_v63  ;;  %v538_v19 = vmax.f32 %v492_v15, 0.0 }
 0x112   : > { %v497_v20 = vpop.f32.mrf.mxu0 }
 0x113   : > { %v539_v22 = vmax.f32 %v494_v18, 0.0  ;;  %v558_v26 = vpack.c.bf16 %v538_v19, %v536_v23  ;;  %v498_v30 = vadd.f32 %v497_v20, %v1835_v0 }
 0x114   : > { %v499_v24 = vpop.f32.mrf.mxu0 }
 0x115   : > { %v559_v25 = vpack.c.bf16 %v539_v22, %v537_v21  ;;  %v500_v28 = vadd.f32 %v499_v24, %v1831_v63  ;;  %v540_v37 = vmax.f32 %v498_v30, 0.0 }
 0x116   : > { %v501_v27 = vpop.f32.mrf.mxu0 }
 0x117   : > { %v502_v29 = vadd.f32 %v501_v27, %v1835_v0  ;;  %850 = vmatprep.mubr.bf16.mxu1 %v559_v25  ;;  %v541_v35 = vmax.f32 %v500_v28, 0.0 }
 0x118   : > { %v503_v31 = vpop.f32.mrf.mxu0  ;;  %851 = vmatmul.mubr.bf16.gmra.mxu1 %v558_v26 }
 0x119   : > { %v504_v32 = vadd.f32 %v503_v31, %v1831_v63  ;;  %v542_v33 = vmax.f32 %v502_v29, 0.0 }
 0x11a   : > { %v507_v34 = vpop.f32.mrf.mxu0 }
 0x11b   : > { %v543_v36 = vmax.f32 %v504_v32, 0.0  ;;  %v560_v40 = vpack.c.bf16 %v542_v33, %v540_v37  ;;  %v508_v44 = vadd.f32 %v507_v34, %v1835_v0 }
 0x11c   : > { %v509_v38 = vpop.f32.mrf.mxu0 }
 0x11d   : > { %v561_v39 = vpack.c.bf16 %v543_v36, %v541_v35  ;;  %v510_v42 = vadd.f32 %v509_v38, %v1831_v63  ;;  %v544_v50 = vmax.f32 %v508_v44, 0.0 }
 0x11e   : > { %v511_v41 = vpop.f32.mrf.mxu0 }
 0x11f   : > { %v512_v43 = vadd.f32 %v511_v41, %v1835_v0  ;;  %860 = vmatprep.mubr.bf16.mxu1 %v561_v39  ;;  %v545_v48 = vmax.f32 %v510_v42, 0.0  ;;  %v1628_v0 = vld [vmem:[%s1962_s5] sm:$0xff]  }
 0x120   : > { %v513_v45 = vpop.f32.mrf.mxu0  ;;  %861 = vmatmul.mubr.bf16.gmra.mxu1 %v560_v40  ;;  %1483 = vmatpush3.bf16.msra.mxu0 %v1628_v0 }
 0x121   : > { %v514_v46 = vadd.f32 %v513_v45, %v1831_v63  ;;  %v546_v47 = vmax.f32 %v512_v43, 0.0  ;;  %v596_v63 = vld [vmem:[%s1961_s4] sm:$0x3] }
 0x122   : > { %v1880_v55 = vrot.slane %v596_v63, %v324_v59  ;;  %v1884_v56 = vrot.slane %v596_v63, %v320_v60 }
 0x123   : > { %v547_v49 = vmax.f32 %v514_v46, 0.0  ;;  %v562_v52 = vpack.c.bf16 %v546_v47, %v544_v50 }
 0x125   : > { %v563_v51 = vpack.c.bf16 %v547_v49, %v545_v48 }
 0x127   : > { %870 = vmatprep.mubr.bf16.mxu1 %v563_v51 }
 0x128   : > { %871 = vmatmul.mubr.bf16.gmra.mxu1 %v562_v52 }
 0x1b0   : > { %v802_v54 = vpop.f32.mrf.mxu1 }
 0x1b1   : > { %v803_v2 = vadd.f32 %v802_v54, %v1884_v56 }
 0x1b2   : > { %v804_v57 = vpop.f32.mrf.mxu1 }
 0x1b3   : > { %v805_v62 = vadd.f32 %v804_v57, %v1880_v55  ;;  %v881_v8 = vmax.f32 %v803_v2, 0.0 }
 0x1b4   : > { %v806_v61 = vpop.f32.mrf.mxu1 }
 0x1b5   : > { %v807_v1 = vadd.f32 %v806_v61, %v1884_v56  ;;  %v882_v7 = vmax.f32 %v805_v62, 0.0 }
 0x1b6   : > { %v808_v3 = vpop.f32.mrf.mxu1 }
 0x1b7   : > { %v809_v4 = vadd.f32 %v808_v3, %v1880_v55  ;;  %v883_v5 = vmax.f32 %v807_v1, 0.0 }
 0x1b8   : > { %v812_v6 = vpop.f32.mrf.mxu1 }
 0x1b9   : > { %v884_v59 = vmax.f32 %v809_v4, 0.0  ;;  %v913_v60 = vpack.c.bf16 %v883_v5, %v881_v8  ;;  %v813_v13 = vadd.f32 %v812_v6, %v1884_v56 }
 0x1ba   : > { %v814_v9 = vpop.f32.mrf.mxu1 }
 0x1bb   : > { %v914_v58 = vpack.c.bf16 %v884_v59, %v882_v7  ;;  %v815_v11 = vadd.f32 %v814_v9, %v1880_v55  ;;  %v885_v20 = vmax.f32 %v813_v13, 0.0 }
 0x1bc   : > { %v816_v10 = vpop.f32.mrf.mxu1 }
 0x1bd   : > { %v817_v12 = vadd.f32 %v816_v10, %v1884_v56  ;;  %1096 = vmatprep.mubr.bf16.mxu0 %v914_v58  ;;  %v886_v18 = vmax.f32 %v815_v11, 0.0 }
 0x1be   : > { %v818_v14 = vpop.f32.mrf.mxu1  ;;  %1097 = vmatmul.mubr.bf16.vlgmr.msra.gmra.mxu0 %v913_v60 }
 0x1bf   : > { %v819_v15 = vadd.f32 %v818_v14, %v1880_v55  ;;  %v887_v16 = vmax.f32 %v817_v12, 0.0 }
 0x1c0   : > { %v822_v17 = vpop.f32.mrf.mxu1 }
 0x1c1   : > { %v888_v19 = vmax.f32 %v819_v15, 0.0  ;;  %v915_v23 = vpack.c.bf16 %v887_v16, %v885_v20  ;;  %v823_v27 = vadd.f32 %v822_v17, %v1884_v56 }
 0x1c2   : > { %v824_v21 = vpop.f32.mrf.mxu1 }
 0x1c3   : > { %v916_v22 = vpack.c.bf16 %v888_v19, %v886_v18  ;;  %v825_v25 = vadd.f32 %v824_v21, %v1880_v55  ;;  %v889_v34 = vmax.f32 %v823_v27, 0.0 }
 0x1c4   : > { %v826_v24 = vpop.f32.mrf.mxu1 }
 0x1c5   : > { %v827_v26 = vadd.f32 %v826_v24, %v1884_v56  ;;  %1104 = vmatprep.mubr.bf16.mxu0 %v916_v22  ;;  %v890_v32 = vmax.f32 %v825_v25, 0.0 }
 0x1c6   : > { %v828_v28 = vpop.f32.mrf.mxu1  ;;  %1105 = vmatmul.mubr.bf16.gmra.mxu0 %v915_v23 }
 0x1c7   : > { %v829_v29 = vadd.f32 %v828_v28, %v1880_v55  ;;  %v891_v30 = vmax.f32 %v827_v26, 0.0 }
 0x1c8   : > { %v832_v31 = vpop.f32.mrf.mxu1 }
 0x1c9   : > { %v892_v33 = vmax.f32 %v829_v29, 0.0  ;;  %v917_v37 = vpack.c.bf16 %v891_v30, %v889_v34  ;;  %v833_v41 = vadd.f32 %v832_v31, %v1884_v56 }
 0x1ca   : > { %v834_v35 = vpop.f32.mrf.mxu1 }
 0x1cb   : > { %v918_v36 = vpack.c.bf16 %v892_v33, %v890_v32  ;;  %v835_v39 = vadd.f32 %v834_v35, %v1880_v55  ;;  %v893_v48 = vmax.f32 %v833_v41, 0.0 }
 0x1cc   : > { %v836_v38 = vpop.f32.mrf.mxu1 }
 0x1cd   : > { %v837_v40 = vadd.f32 %v836_v38, %v1884_v56  ;;  %1112 = vmatprep.mubr.bf16.mxu0 %v918_v36  ;;  %v894_v46 = vmax.f32 %v835_v39, 0.0 }
 0x1ce   : > { %v838_v42 = vpop.f32.mrf.mxu1  ;;  %1113 = vmatmul.mubr.bf16.gmra.mxu0 %v917_v37 }
 0x1cf   : > { %v839_v43 = vadd.f32 %v838_v42, %v1880_v55  ;;  %v895_v44 = vmax.f32 %v837_v40, 0.0 }
 0x1d0   : > { %v842_v45 = vpop.f32.mrf.mxu1 }
 0x1d1   : > { %v896_v47 = vmax.f32 %v839_v43, 0.0  ;;  %v919_v51 = vpack.c.bf16 %v895_v44, %v893_v48  ;;  %v843_v63 = vadd.f32 %v842_v45, %v1884_v56 }
 0x1d2   : > { %v844_v49 = vpop.f32.mrf.mxu1 }
 0x1d3   : > { %v920_v50 = vpack.c.bf16 %v896_v47, %v894_v46  ;;  %v845_v53 = vadd.f32 %v844_v49, %v1880_v55  ;;  %v897_v3 = vmax.f32 %v843_v63, 0.0 }
 0x1d4   : > { %v846_v52 = vpop.f32.mrf.mxu1 }
 0x1d5   : > { %v847_v0 = vadd.f32 %v846_v52, %v1884_v56  ;;  %1120 = vmatprep.mubr.bf16.mxu0 %v920_v50  ;;  %v898_v1 = vmax.f32 %v845_v53, 0.0 }
 0x1d6   : > { %v848_v54 = vpop.f32.mrf.mxu1  ;;  %1121 = vmatmul.mubr.bf16.gmra.mxu0 %v919_v51 }
 0x1d7   : > { %v849_v57 = vadd.f32 %v848_v54, %v1880_v55  ;;  %v899_v61 = vmax.f32 %v847_v0, 0.0 }
 0x1d8   : > { %v852_v62 = vpop.f32.mrf.mxu1 }
 0x1d9   : > { %v900_v2 = vmax.f32 %v849_v57, 0.0  ;;  %v921_v6 = vpack.c.bf16 %v899_v61, %v897_v3  ;;  %v853_v9 = vadd.f32 %v852_v62, %v1884_v56 }
 0x1da   : > { %v854_v4 = vpop.f32.mrf.mxu1 }
 0x1db   : > { %v922_v5 = vpack.c.bf16 %v900_v2, %v898_v1  ;;  %v855_v59 = vadd.f32 %v854_v4, %v1880_v55  ;;  %v901_v14 = vmax.f32 %v853_v9, 0.0 }
 0x1dc   : > { %v856_v7 = vpop.f32.mrf.mxu1 }
 0x1dd   : > { %v857_v8 = vadd.f32 %v856_v7, %v1884_v56  ;;  %1128 = vmatprep.mubr.bf16.mxu0 %v922_v5  ;;  %v902_v12 = vmax.f32 %v855_v59, 0.0 }
 0x1de   : > { %v858_v58 = vpop.f32.mrf.mxu1  ;;  %1129 = vmatmul.mubr.bf16.gmra.mxu0 %v921_v6 }
 0x1df   : > { %v859_v60 = vadd.f32 %v858_v58, %v1880_v55  ;;  %v903_v10 = vmax.f32 %v857_v8, 0.0 }
 0x1e0   : > { %v862_v11 = vpop.f32.mrf.mxu1 }
 0x1e1   : > { %v904_v13 = vmax.f32 %v859_v60, 0.0  ;;  %v923_v17 = vpack.c.bf16 %v903_v10, %v901_v14  ;;  %v863_v21 = vadd.f32 %v862_v11, %v1884_v56 }
 0x1e2   : > { %v864_v15 = vpop.f32.mrf.mxu1 }
 0x1e3   : > { %v924_v16 = vpack.c.bf16 %v904_v13, %v902_v12  ;;  %v865_v19 = vadd.f32 %v864_v15, %v1880_v55  ;;  %v905_v28 = vmax.f32 %v863_v21, 0.0 }
 0x1e4   : > { %v866_v18 = vpop.f32.mrf.mxu1 }
 0x1e5   : > { %v867_v20 = vadd.f32 %v866_v18, %v1884_v56  ;;  %1136 = vmatprep.mubr.bf16.mxu0 %v924_v16  ;;  %v906_v26 = vmax.f32 %v865_v19, 0.0 }
 0x1e6   : > { %v868_v22 = vpop.f32.mrf.mxu1  ;;  %1137 = vmatmul.mubr.bf16.gmra.mxu0 %v923_v17 }
 0x1e7   : > { %v869_v23 = vadd.f32 %v868_v22, %v1880_v55  ;;  %v907_v24 = vmax.f32 %v867_v20, 0.0 }
 0x1e8   : > { %v872_v25 = vpop.f32.mrf.mxu1 }
 0x1e9   : > { %v908_v27 = vmax.f32 %v869_v23, 0.0  ;;  %v925_v31 = vpack.c.bf16 %v907_v24, %v905_v28  ;;  %v873_v35 = vadd.f32 %v872_v25, %v1884_v56 }
 0x1ea   : > { %v874_v29 = vpop.f32.mrf.mxu1 }
 0x1eb   : > { %v926_v30 = vpack.c.bf16 %v908_v27, %v906_v26  ;;  %v875_v33 = vadd.f32 %v874_v29, %v1880_v55  ;;  %v909_v41 = vmax.f32 %v873_v35, 0.0 }
 0x1ec   : > { %v876_v32 = vpop.f32.mrf.mxu1 }
 0x1ed   : > { %v877_v34 = vadd.f32 %v876_v32, %v1884_v56  ;;  %1144 = vmatprep.mubr.bf16.mxu0 %v926_v30  ;;  %v910_v39 = vmax.f32 %v875_v33, 0.0  ;;  %v1921_v56 = vld [vmem:[%s1963_s6] ss:$0 sm:$0xff] }
 0x1ee   : > { %v878_v36 = vpop.f32.mrf.mxu1  ;;  %1145 = vmatmul.mubr.bf16.gmra.mxu0 %v925_v31 }
 0x1ef   : > { %v879_v37 = vadd.f32 %v878_v36, %v1880_v55  ;;  %v911_v38 = vmax.f32 %v877_v34, 0.0 }
 0x1f1   : > { %v912_v40 = vmax.f32 %v879_v37, 0.0  ;;  %v927_v43 = vpack.c.bf16 %v911_v38, %v909_v41 }
 0x1f3   : > { %v928_v42 = vpack.c.bf16 %v912_v40, %v910_v39 }
 0x1f5   : > { %1152 = vmatprep.mubr.bf16.mxu0 %v928_v42 }
 0x1f6   : > { %1153 = vmatmul.mubr.bf16.gmra.mxu0 %v927_v43 }
 0x27e   : > { %v1484_v44 = vpop.f32.mrf.mxu0 }
 0x280   : > { %v1485_v45 = vpop.f32.mrf.mxu0 }
 0x281   : > { %v1486_v47 = vadd.f32 %v1485_v45, %v1484_v44 }
 0x282   : > { %v1487_v46 = vpop.f32.mrf.mxu0 }
 0x283   : > { %v1099_v50 = vadd.f32 %v1486_v47, %v1921_v56 }
 0x284   : > { %v1488_v48 = vpop.f32.mrf.mxu0 }
 0x285   : > { %v1489_v55 = vadd.f32 %v1488_v48, %v1487_v46 }
 0x286   : > { %v1490_v49 = vpop.f32.mrf.mxu0 }
 0x287   : > { %v1102_v51 = vadd.f32 %v1489_v55, %v1921_v56 }
 0x288   : > { %v1491_v52 = vpop.f32.mrf.mxu0 }
 0x289   : > { %v1424_v53 = vpack.c.bf16 %v1102_v51, %v1099_v50  ;;  %v1492_v63 = vadd.f32 %v1491_v52, %v1490_v49 }
 0x28a   : > { %v1493_v0 = vpop.f32.mrf.mxu0 }
 0x28b   : > { %1425 = vst [vmem:[%s1930_s21] sm:$0xff] %v1424_v53   ;;  %v1107_v62 = vadd.f32 %v1492_v63, %v1921_v56 }
 0x28c   : > { %v1494_v54 = vpop.f32.mrf.mxu0 }
 0x28d   : > { %v1495_v57 = vadd.f32 %v1494_v54, %v1493_v0 }
 0x28e   : > { %v1496_v61 = vpop.f32.mrf.mxu0 }
 0x28f   : > { %v1110_v1 = vadd.f32 %v1495_v57, %v1921_v56 }
 0x290   : > { %v1497_v2 = vpop.f32.mrf.mxu0 }
 0x291   : > { %v1429_v3 = vpack.c.bf16 %v1110_v1, %v1107_v62  ;;  %v1498_v5 = vadd.f32 %v1497_v2, %v1496_v61 }
 0x292   : > { %v1499_v4 = vpop.f32.mrf.mxu0 }
 0x293   : > { %1461 = vst [vmem:[%s1930_s21 + $0x8] sm:$0xff] %v1429_v3   ;;  %v1115_v8 = vadd.f32 %v1498_v5, %v1921_v56 }
 0x294   : > { %v1500_v6 = vpop.f32.mrf.mxu0 }
 0x295   : > { %v1501_v7 = vadd.f32 %v1500_v6, %v1499_v4 }
 0x296   : > { %v1502_v59 = vpop.f32.mrf.mxu0 }
 0x297   : > { %v1118_v9 = vadd.f32 %v1501_v7, %v1921_v56 }
 0x298   : > { %v1503_v58 = vpop.f32.mrf.mxu0 }
 0x299   : > { %v1434_v60 = vpack.c.bf16 %v1118_v9, %v1115_v8  ;;  %v1504_v11 = vadd.f32 %v1503_v58, %v1502_v59 }
 0x29a   : > { %v1505_v10 = vpop.f32.mrf.mxu0 }
 0x29b   : > { %1462 = vst [vmem:[%s1930_s21 + $0x10] sm:$0xff] %v1434_v60   ;;  %v1123_v15 = vadd.f32 %v1504_v11, %v1921_v56 }
 0x29c   : > { %v1506_v12 = vpop.f32.mrf.mxu0 }
 0x29d   : > { %v1507_v13 = vadd.f32 %v1506_v12, %v1505_v10 }
 0x29e   : > { %v1508_v14 = vpop.f32.mrf.mxu0 }
 0x29f   : > { %v1126_v16 = vadd.f32 %v1507_v13, %v1921_v56 }
 0x2a0   : > { %v1509_v17 = vpop.f32.mrf.mxu0 }
 0x2a1   : > { %v1439_v18 = vpack.c.bf16 %v1126_v16, %v1123_v15  ;;  %v1510_v20 = vadd.f32 %v1509_v17, %v1508_v14 }
 0x2a2   : > { %v1511_v19 = vpop.f32.mrf.mxu0 }
 0x2a3   : > { %1463 = vst [vmem:[%s1930_s21 + $0x18] sm:$0xff] %v1439_v18   ;;  %v1131_v24 = vadd.f32 %v1510_v20, %v1921_v56 }
 0x2a4   : > { %v1512_v21 = vpop.f32.mrf.mxu0 }
 0x2a5   : > { %v1513_v22 = vadd.f32 %v1512_v21, %v1511_v19 }
 0x2a6   : > { %v1514_v23 = vpop.f32.mrf.mxu0 }
 0x2a7   : > { %v1134_v25 = vadd.f32 %v1513_v22, %v1921_v56 }
 0x2a8   : > { %v1515_v26 = vpop.f32.mrf.mxu0 }
 0x2a9   : > { %v1444_v27 = vpack.c.bf16 %v1134_v25, %v1131_v24  ;;  %v1516_v29 = vadd.f32 %v1515_v26, %v1514_v23 }
 0x2aa   : > { %v1517_v28 = vpop.f32.mrf.mxu0 }
 0x2ab   : > { %1464 = vst [vmem:[%s1930_s21 + $0x20] sm:$0xff] %v1444_v27   ;;  %v1139_v33 = vadd.f32 %v1516_v29, %v1921_v56 }
 0x2ac   : > { %v1518_v30 = vpop.f32.mrf.mxu0 }
 0x2ad   : > { %v1519_v31 = vadd.f32 %v1518_v30, %v1517_v28 }
 0x2ae   : > { %v1520_v32 = vpop.f32.mrf.mxu0 }
 0x2af   : > { %v1142_v34 = vadd.f32 %v1519_v31, %v1921_v56 }
 0x2b0   : > { %v1521_v35 = vpop.f32.mrf.mxu0 }
 0x2b1   : > { %v1449_v36 = vpack.c.bf16 %v1142_v34, %v1139_v33  ;;  %v1522_v38 = vadd.f32 %v1521_v35, %v1520_v32 }
 0x2b2   : > { %v1523_v37 = vpop.f32.mrf.mxu0 }
 0x2b3   : > { %1465 = vst [vmem:[%s1930_s21 + $0x28] sm:$0xff] %v1449_v36   ;;  %v1147_v42 = vadd.f32 %v1522_v38, %v1921_v56 }
 0x2b4   : > { %v1524_v39 = vpop.f32.mrf.mxu0 }
 0x2b5   : > { %v1525_v40 = vadd.f32 %v1524_v39, %v1523_v37 }
 0x2b6   : > { %v1526_v41 = vpop.f32.mrf.mxu0 }
 0x2b7   : > { %v1150_v43 = vadd.f32 %v1525_v40, %v1921_v56 }
 0x2b8   : > { %v1527_v44 = vpop.f32.mrf.mxu0 }
 0x2b9   : > { %v1454_v45 = vpack.c.bf16 %v1150_v43, %v1147_v42  ;;  %v1528_v47 = vadd.f32 %v1527_v44, %v1526_v41 }
 0x2ba   : > { %v1529_v46 = vpop.f32.mrf.mxu0 }
 0x2bb   : > { %1466 = vst [vmem:[%s1930_s21 + $0x30] sm:$0xff] %v1454_v45   ;;  %v1155_v49 = vadd.f32 %v1528_v47, %v1921_v56 }
 0x2bc   : > { %v1530_v48 = vpop.f32.mrf.mxu0 }
 0x2bd   : > { %v1531_v55 = vadd.f32 %v1530_v48, %v1529_v46 }
 0x2bf   : > { %v1158_v50 = vadd.f32 %v1531_v55, %v1921_v56 }
 0x2c1   : > { %v1459_v51 = vpack.c.bf16 %v1158_v50, %v1155_v49 }
 0x2c3   : > { %1467 = vst [vmem:[%s1930_s21 + $0x38] sm:$0xff] %v1459_v51  }
 0x2c4 PF: > { %s18_s24 = sadd.s32 1, %s1665_s24  }
 0x2c5   : > { %p15_p1 = scmp.ge.s32.totalorder %s18_s24, 4  }
 0x2c7   :  { %17 = sbr.rel (!%p15_p1) target bundleno = 1 (0x1), region = 83 }
 0x2cc   :  { %1263 = vsyncpa [#allocation3], 1 }
 0x2cd   :  { %1265 = vsyncpa [#allocation3 + $0x1], 1 }

// kernel: _dqn_forward_impl.1
= control target key start
LH: loop header
LB: loop body
LE: loop exit
PB: predicated region body
PF: predicated region fallthrough
CT: control target
= control target key end

     0   :  { %12 = vsyncpa [#allocation3], 0  ;;  %s1711_s24 = smov 0   ;;  %s1957_s0 = inlined_call_operand.vmem [shape: bf16[256,16], index: 0, kind: input, shape index: {}]   ;;  %s1958_s1 = inlined_call_operand.vmem [shape: bf16[16,256], index: 1, kind: input, shape index: {}]   ;;  %s1959_s2 = inlined_call_operand.vmem [shape: f32[1,256], index: 2, kind: input, shape index: {}]   ;;  %s1960_s3 = inlined_call_operand.hbm [shape: bf16[256,256], index: 3, kind: input, shape index: {}]   ;;  %s1961_s4 = inlined_call_operand.vmem [shape: f32[1,256], index: 4, kind: input, shape index: {}]   ;;  %s1962_s5 = inlined_call_operand.vmem [shape: bf16[256,128], index: 5, kind: input, shape index: {}]   ;;  %s1963_s6 = inlined_call_operand.vmem [shape: f32[1,128], index: 6, kind: input, shape index: {}]   ;;  %s1964_s7 = inlined_call_operand.vmem [shape: bf16[256,128], index: 7, kind: output, shape index: {}]  }
   0x1 LB: > { %s1309_s25 = sadd.s32 4294967295, %s1665_s24   ;;  %p1311_p0 = scmp.ge.s32.totalorder %s1665_s24, 1  ;;  %s1665_s24 = sphi %s1711_s24, %s18_s24  }
   0x2   : > { %p201_p1 = scmp.lt.s32.totalorder %s1665_s24, 3  ;;  %s1667_s26 = smov [#allocation2]  }
   0x3   : > { %s219_s27 = sshll.u32 %s1667_s26, 4  ;;  %p1723_p3 = scmp.eq.s32.totalorder %s1309_s25, 0  ;;  %s220_s27 = int_to_ptr.vmem [resolvable:$true] %s219_s27 }
   0x4   : > { %p1719_p2 = pnand %p1311_p0, %p201_p1  ;;  %s1640_s30 = scalar_lea.vmem %s220_s27, 4096 }
   0x5   : > { %p1641_p7 = scmp.ne.s32.totalorder %s220_s27, %s1640_s30  ;;  %p1648_p10 = scmp.lt.s32.totalorder %s220_s27, %s220_s27 }
   0x6   : > { %p1536_p4 = pneg %p1719_p2  ;;  %p1649_p11 = scmp.lt.s32.totalorder %s1640_s30, %s1640_s30 }
   0x8   : > { %p1537_p5 = pnand %p1723_p3, %p1536_p4  ;;  %p1650_p12 = por %p1649_p11, %p1648_p10 }
   0xa   : > { %p1631_p6 = pneg %p1537_p5 }
   0xc   : > { %p1643_p8 = pnand %p1641_p7, %p1631_p6 }
   0xe   : > { %p1644_p9 = pneg %p1643_p8 }
  0x10   : > { %p1651_p13 = pnand %p1650_p12, %p1644_p9 }
  0x12   : > { %1654 = shalt.err (!%p1651_p13)
}
  0x13   : > { %s1668_s8 = smov 128   ;;  %s1669_s9 = smov 8  }
  0x14   : > { %1539 = dma.hbm_to_vmem [thread:$0]  (!%p1537_p5), %s1960_s3, 4096, %s220_s27, [#allocation3], %s1668_s8, %s1668_s8, %s1669_s9  }
  0x15   : > { %253 = sbr.rel (%p1719_p2) target bundleno = 708 (0x2c4), region = 48 }
  0x1a   : > { %1660 = dma.done.wait (%p1723_p3), [#allocation3], 4096  }
  0x1b   : > { %1662 = vsyncadd (%p1723_p3), [#allocation3], 4294963200  ;;  %s1316_s12 = sshll.u32 %s1309_s25, 4  ;;  %v1670_v0 = vmov 0   ;;  %v1554_v1 = vld [vmem:[%s1958_s1 + $0x4] ss:$8 sps:$4 sm:$0xff]   ;;  %v318_v57 = vlaneseq }
  0x1c   : > { %435 = vmatprep.mubr.bf16.mxu0 %v1670_v0  ;;  %p286_p0 = scmp.lt.s32.totalorder %s1316_s12, 31  ;;  %v1556_v2 = vld [vmem:[%s1958_s1] ss:$8 sps:$4 sm:$0xff]   ;;  %417 = vmatprep.subr.bf16.mxu0 %v1554_v1  ;;  %vm378_vm0 = vcmask 130048   ;;  %v1565_v5 = vld [vmem:[#allocation2 + $0x74] ss:$8 sps:$4 sm:$0xff]  }
  0x1d   : > { %418 = vmatpush1.bf16.msra.mxu0 %v1556_v2  ;;  %v1567_v6 = vld [vmem:[#allocation2 + $0x70] ss:$8 sps:$4 sm:$0xff]   ;;  %v1568_v7 = vld [vmem:[#allocation2 + $0x64] ss:$8 sps:$4 sm:$0xff]   ;;  %768 = vmatprep.subr.bf16.mxu1 %v1565_v5  ;;  %v1570_v8 = vld [vmem:[#allocation2 + $0x60] ss:$8 sps:$4 sm:$0xff]  }
  0x1e   : > { %s1968_s12 = smov (!%p286_p0, %s1316_s12), 31  ;;  %769 = vmatpush1.bf16.msra.mxu1 %v1567_v6  ;;  %v1571_v9 = vld [vmem:[#allocation2 + $0x54] ss:$8 sps:$4 sm:$0xff]   ;;  %v1573_v10 = vld [vmem:[#allocation2 + $0x50] ss:$8 sps:$4 sm:$0xff]   ;;  %v1617_v47 = vld [vmem:[%s1962_s5 + $0x68] sm:$0xff]  }
  0x1f   : > { %s1317_s13 = sshll.u32 %s1968_s12, 2  ;;  %770 = vmatprep.subr.bf16.mxu1 %v1568_v7  ;;  %v1574_v12 = vld [vmem:[#allocation2 + $0x44] ss:$8 sps:$4 sm:$0xff]   ;;  %v1576_v13 = vld [vmem:[#allocation2 + $0x40] ss:$8 sps:$4 sm:$0xff]   ;;  %v1613_v43 = vld [vmem:[%s1962_s5 + $0x78] sm:$0xff]  }
  0x20   : > { %s1749_s16 = scalar_lea.vmem %s1957_s0, %s1317_s13  ;;  %v1577_v14 = vld [vmem:[#allocation2 + $0x34] ss:$8 sps:$4 sm:$0xff]   ;;  %v1579_v15 = vld [vmem:[#allocation2 + $0x30] ss:$8 sps:$4 sm:$0xff]   ;;  %v1580_v17 = vld [vmem:[#allocation2 + $0x24] ss:$8 sps:$4 sm:$0xff]   ;;  %1468 = vmatprep.subr.bf16.mxu0 %v1613_v43  ;;  %s1930_s21 = scalar_lea.vmem %s1964_s7, %s1317_s13 }
  0x21   : > { %v1557_v3 = vld [vmem:[%s1749_s16] sm:$0xff]   ;;  %v1558_v4 = vld [vmem:[%s1749_s16 + $0x8] sm:$0xff]   ;;  %v1559_v11 = vld [vmem:[%s1749_s16 + $0x10] sm:$0xff]   ;;  %v1822_v58 = vshrl.u32 %v318_v57, 7 }
  0x22   : > { %1330 = vmatmul.mubr.msk.bf16.vlgmr.msra.gmra.mxu0 %vm378_vm0, %v1557_v3  ;;  %771 = vmatpush1.bf16.msra.mxu1 %v1570_v8  ;;  %v1560_v16 = vld [vmem:[%s1749_s16 + $0x18] sm:$0xff]   ;;  %v1582_v18 = vld [vmem:[#allocation2 + $0x20] ss:$8 sps:$4 sm:$0xff]   ;;  %v1586_v22 = vld [vmem:[#allocation2 + $0x4] ss:$8 sps:$4 sm:$0xff]  }
  0x23   : > { %445 = vmatprep.mubr.bf16.mxu0 %v1670_v0  ;;  %772 = vmatprep.subr.bf16.mxu1 %v1571_v9  ;;  %v1583_v19 = vld [vmem:[#allocation2 + $0x14] ss:$8 sps:$4 sm:$0xff]   ;;  %v1585_v20 = vld [vmem:[#allocation2 + $0x10] ss:$8 sps:$4 sm:$0xff]   ;;  %v1561_v21 = vld [vmem:[%s1749_s16 + $0x20] sm:$0xff]   ;;  %v324_v59 = vsub.s32 1, %v1822_v58 }
  0x24   : > { %v1588_v23 = vld [vmem:[#allocation2] ss:$8 sps:$4 sm:$0xff]   ;;  %v1589_v24 = vld [vmem:[#allocation2 + $0xf4] ss:$8 sps:$4 sm:$0xff]   ;;  %v1591_v25 = vld [vmem:[#allocation2 + $0xf0] ss:$8 sps:$4 sm:$0xff]  }
  0x25   : > { %v1562_v26 = vld [vmem:[%s1749_s16 + $0x28] sm:$0xff]   ;;  %v1595_v29 = vld [vmem:[#allocation2 + $0xd4] ss:$8 sps:$4 sm:$0xff]   ;;  %v1597_v30 = vld [vmem:[#allocation2 + $0xd0] ss:$8 sps:$4 sm:$0xff]   ;;  %v320_v60 = vsub.s32 0, %v1822_v58 }
  0x26   : > { %773 = vmatpush1.bf16.msra.mxu1 %v1573_v10  ;;  %v1592_v27 = vld [vmem:[#allocation2 + $0xe4] ss:$8 sps:$4 sm:$0xff]   ;;  %v1594_v28 = vld [vmem:[#allocation2 + $0xe0] ss:$8 sps:$4 sm:$0xff]   ;;  %v1563_v31 = vld [vmem:[%s1749_s16 + $0x30] sm:$0xff]  }
  0x27   : > { %774 = vmatprep.subr.bf16.mxu1 %v1574_v12  ;;  %v1598_v32 = vld [vmem:[#allocation2 + $0xc4] ss:$8 sps:$4 sm:$0xff]   ;;  %v1600_v33 = vld [vmem:[#allocation2 + $0xc0] ss:$8 sps:$4 sm:$0xff]   ;;  %v1601_v34 = vld [vmem:[#allocation2 + $0xb4] ss:$8 sps:$4 sm:$0xff]  }
  0x28   : > { %v1603_v35 = vld [vmem:[#allocation2 + $0xb0] ss:$8 sps:$4 sm:$0xff]   ;;  %v1604_v37 = vld [vmem:[#allocation2 + $0xa4] ss:$8 sps:$4 sm:$0xff]   ;;  %v1606_v38 = vld [vmem:[#allocation2 + $0xa0] ss:$8 sps:$4 sm:$0xff]  }
  0x29   : > { %v1564_v36 = vld [vmem:[%s1749_s16 + $0x38] sm:$0xff]   ;;  %v1610_v41 = vld [vmem:[#allocation2 + $0x84] ss:$8 sps:$4 sm:$0xff]   ;;  %v1612_v42 = vld [vmem:[#allocation2 + $0x80] ss:$8 sps:$4 sm:$0xff]  }
  0x2a   : > { %1331 = vmatmul.mubr.msk.bf16.gmra.mxu0 %vm378_vm0, %v1558_v4  ;;  %775 = vmatpush1.bf16.msra.mxu1 %v1576_v13  ;;  %v1607_v39 = vld [vmem:[#allocation2 + $0x94] ss:$8 sps:$4 sm:$0xff]   ;;  %v1609_v40 = vld [vmem:[#allocation2 + $0x90] ss:$8 sps:$4 sm:$0xff]   ;;  %v1618_v48 = vld [vmem:[%s1962_s5 + $0x28] sm:$0xff]  }
  0x2b   : > { %455 = vmatprep.mubr.bf16.mxu0 %v1670_v0  ;;  %776 = vmatprep.subr.bf16.mxu1 %v1577_v14  ;;  %v1614_v44 = vld [vmem:[%s1962_s5 + $0x38] sm:$0xff]   ;;  %v1615_v45 = vld [vmem:[%s1962_s5 + $0x70] sm:$0xff]   ;;  %v1619_v49 = vld [vmem:[%s1962_s5 + $0x60] sm:$0xff]  }
  0x2c   : > { %1469 = vmatpush3.bf16.msra.mxu0 %v1614_v44  ;;  %v1616_v46 = vld [vmem:[%s1962_s5 + $0x30] sm:$0xff]   ;;  %v1620_v50 = vld [vmem:[%s1962_s5 + $0x20] sm:$0xff]   ;;  %v1621_v51 = vld [vmem:[%s1962_s5 + $0x58] sm:$0xff]  }
  0x2d   : > { %1470 = vmatprep.subr.bf16.mxu0 %v1615_v45  ;;  %v1622_v52 = vld [vmem:[%s1962_s5 + $0x18] sm:$0xff]   ;;  %v1623_v53 = vld [vmem:[%s1962_s5 + $0x50] sm:$0xff]   ;;  %v1625_v55 = vld [vmem:[%s1962_s5 + $0x48] sm:$0xff]  }
  0x2e   : > { %777 = vmatpush1.bf16.msra.mxu1 %v1579_v15  ;;  %v1624_v54 = vld [vmem:[%s1962_s5 + $0x10] sm:$0xff]   ;;  %v1626_v56 = vld [vmem:[%s1962_s5 + $0x8] sm:$0xff]   ;;  %v316_v61 = vld [vmem:[%s1959_s2] sm:$0x3] }
  0x2f   : > { %778 = vmatprep.subr.bf16.mxu1 %v1580_v17  ;;  %v1831_v63 = vrot.slane %v316_v61, %v324_v59 }
  0x30   : > { %1471 = vmatpush3.bf16.msra.mxu0 %v1616_v46 }
  0x31   : > { %1472 = vmatprep.subr.bf16.mxu0 %v1617_v47 }
  0x32   : > { %1332 = vmatmul.mubr.msk.bf16.gmra.mxu0 %vm378_vm0, %v1559_v11  ;;  %779 = vmatpush1.bf16.msra.mxu1 %v1582_v18 }
  0x33   : > { %465 = vmatprep.mubr.bf16.mxu0 %v1670_v0  ;;  %780 = vmatprep.subr.bf16.mxu1 %v1583_v19 }
  0x34   : > { %1473 = vmatpush3.bf16.msra.mxu0 %v1618_v48 }
  0x35   : > { %1474 = vmatprep.subr.bf16.mxu0 %v1619_v49 }
  0x36   : > { %781 = vmatpush1.bf16.msra.mxu1 %v1585_v20 }
  0x37   : > { %782 = vmatprep.subr.bf16.mxu1 %v1586_v22 }
  0x38   : > { %1475 = vmatpush3.bf16.msra.mxu0 %v1620_v50 }
  0x39   : > { %1476 = vmatprep.subr.bf16.mxu0 %v1621_v51 }
  0x3a   : > { %1333 = vmatmul.mubr.msk.bf16.gmra.mxu0 %vm378_vm0, %v1560_v16  ;;  %783 = vmatpush1.bf16.msra.mxu1 %v1588_v23 }
  0x3b   : > { %475 = vmatprep.mubr.bf16.mxu0 %v1670_v0  ;;  %784 = vmatprep.subr.bf16.mxu1 %v1589_v24 }
  0x3c   : > { %1477 = vmatpush3.bf16.msra.mxu0 %v1622_v52 }
  0x3d   : > { %1478 = vmatprep.subr.bf16.mxu0 %v1623_v53 }
  0x3e   : > { %785 = vmatpush2.bf16.msra.mxu1 %v1591_v25 }
  0x3f   : > { %786 = vmatprep.subr.bf16.mxu1 %v1592_v27 }
  0x40   : > { %1479 = vmatpush3.bf16.msra.mxu0 %v1624_v54 }
  0x41   : > { %1480 = vmatprep.subr.bf16.mxu0 %v1625_v55 }
  0x42   : > { %1334 = vmatmul.mubr.msk.bf16.gmra.mxu0 %vm378_vm0, %v1561_v21  ;;  %787 = vmatpush2.bf16.msra.mxu1 %v1594_v28 }
  0x43   : > { %485 = vmatprep.mubr.bf16.mxu0 %v1670_v0  ;;  %788 = vmatprep.subr.bf16.mxu1 %v1595_v29 }
  0x44   : > { %1481 = vmatpush3.bf16.msra.mxu0 %v1626_v56 }
  0x46   : > { %789 = vmatpush2.bf16.msra.mxu1 %v1597_v30 }
  0x47   : > { %790 = vmatprep.subr.bf16.mxu1 %v1598_v32 }
  0x4a   : > { %1335 = vmatmul.mubr.msk.bf16.gmra.mxu0 %vm378_vm0, %v1562_v26  ;;  %791 = vmatpush2.bf16.msra.mxu1 %v1600_v33 }
  0x4b   : > { %495 = vmatprep.mubr.bf16.mxu0 %v1670_v0  ;;  %792 = vmatprep.subr.bf16.mxu1 %v1601_v34 }
  0x4e   : > { %793 = vmatpush2.bf16.msra.mxu1 %v1603_v35 }
  0x4f   : > { %794 = vmatprep.subr.bf16.mxu1 %v1604_v37 }
  0x52   : > { %1336 = vmatmul.mubr.msk.bf16.gmra.mxu0 %vm378_vm0, %v1563_v31  ;;  %795 = vmatpush2.bf16.msra.mxu1 %v1606_v38 }
  0x53   : > { %505 = vmatprep.mubr.bf16.mxu0 %v1670_v0  ;;  %796 = vmatprep.subr.bf16.mxu1 %v1607_v39  ;;  %v1835_v0 = vrot.slane %v316_v61, %v320_v60 }
  0x56   : > { %797 = vmatpush2.bf16.msra.mxu1 %v1609_v40 }
  0x57   : > { %798 = vmatprep.subr.bf16.mxu1 %v1610_v41 }
  0x5a   : > { %1337 = vmatmul.mubr.msk.bf16.gmra.mxu0 %vm378_vm0, %v1564_v36  ;;  %799 = vmatpush2.bf16.msra.mxu1 %v1612_v42 }
  0xe2   : > { %v437_v62 = vpop.f32.mrf.mxu0 }
  0xe3   : > { %v438_v5 = vadd.f32 %v437_v62, %v1835_v0 }
  0xe4   : > { %v439_v1 = vpop.f32.mrf.mxu0 }
  0xe5   : > { %v440_v3 = vadd.f32 %v439_v1, %v1831_v63  ;;  %v516_v12 = vmax.f32 %v438_v5, 0.0 }
  0xe6   : > { %v441_v2 = vpop.f32.mrf.mxu0 }
  0xe7   : > { %v442_v4 = vadd.f32 %v441_v2, %v1835_v0  ;;  %v517_v10 = vmax.f32 %v440_v3, 0.0 }
  0xe8   : > { %v443_v6 = vpop.f32.mrf.mxu0 }
  0xe9   : > { %v444_v7 = vadd.f32 %v443_v6, %v1831_v63  ;;  %v518_v8 = vmax.f32 %v442_v4, 0.0 }
  0xea   : > { %v447_v9 = vpop.f32.mrf.mxu0 }
  0xeb   : > { %v519_v11 = vmax.f32 %v444_v7, 0.0  ;;  %v548_v15 = vpack.c.bf16 %v518_v8, %v516_v12  ;;  %v448_v19 = vadd.f32 %v447_v9, %v1835_v0 }
  0xec   : > { %v449_v13 = vpop.f32.mrf.mxu0 }
  0xed   : > { %v549_v14 = vpack.c.bf16 %v519_v11, %v517_v10  ;;  %v450_v17 = vadd.f32 %v449_v13, %v1831_v63  ;;  %v520_v26 = vmax.f32 %v448_v19, 0.0 }
  0xee   : > { %v451_v16 = vpop.f32.mrf.mxu0 }
  0xef   : > { %v452_v18 = vadd.f32 %v451_v16, %v1835_v0  ;;  %800 = vmatprep.mubr.bf16.mxu1 %v549_v14  ;;  %v521_v24 = vmax.f32 %v450_v17, 0.0 }
  0xf0   : > { %v453_v20 = vpop.f32.mrf.mxu0  ;;  %801 = vmatmul.mubr.bf16.vlgmr.msra.gmra.mxu1 %v548_v15 }
  0xf1   : > { %v454_v21 = vadd.f32 %v453_v20, %v1831_v63  ;;  %v522_v22 = vmax.f32 %v452_v18, 0.0 }
  0xf2   : > { %v457_v23 = vpop.f32.mrf.mxu0 }
  0xf3   : > { %v523_v25 = vmax.f32 %v454_v21, 0.0  ;;  %v550_v29 = vpack.c.bf16 %v522_v22, %v520_v26  ;;  %v458_v33 = vadd.f32 %v457_v23, %v1835_v0 }
  0xf4   : > { %v459_v27 = vpop.f32.mrf.mxu0 }
  0xf5   : > { %v551_v28 = vpack.c.bf16 %v523_v25, %v521_v24  ;;  %v460_v31 = vadd.f32 %v459_v27, %v1831_v63  ;;  %v524_v40 = vmax.f32 %v458_v33, 0.0 }
  0xf6   : > { %v461_v30 = vpop.f32.mrf.mxu0 }
  0xf7   : > { %v462_v32 = vadd.f32 %v461_v30, %v1835_v0  ;;  %810 = vmatprep.mubr.bf16.mxu1 %v551_v28  ;;  %v525_v38 = vmax.f32 %v460_v31, 0.0 }
  0xf8   : > { %v463_v34 = vpop.f32.mrf.mxu0  ;;  %811 = vmatmul.mubr.bf16.gmra.mxu1 %v550_v29 }
  0xf9   : > { %v464_v35 = vadd.f32 %v463_v34, %v1831_v63  ;;  %v526_v36 = vmax.f32 %v462_v32, 0.0 }
  0xfa   : > { %v467_v37 = vpop.f32.mrf.mxu0 }
  0xfb   : > { %v527_v39 = vmax.f32 %v464_v35, 0.0  ;;  %v552_v43 = vpack.c.bf16 %v526_v36, %v524_v40  ;;  %v468_v47 = vadd.f32 %v467_v37, %v1835_v0 }
  0xfc   : > { %v469_v41 = vpop.f32.mrf.mxu0 }
  0xfd   : > { %v553_v42 = vpack.c.bf16 %v527_v39, %v525_v38  ;;  %v470_v45 = vadd.f32 %v469_v41, %v1831_v63  ;;  %v528_v54 = vmax.f32 %v468_v47, 0.0 }
  0xfe   : > { %v471_v44 = vpop.f32.mrf.mxu0 }
  0xff   : > { %v472_v46 = vadd.f32 %v471_v44, %v1835_v0  ;;  %820 = vmatprep.mubr.bf16.mxu1 %v553_v42  ;;  %v529_v52 = vmax.f32 %v470_v45, 0.0 }
 0x100   : > { %v473_v48 = vpop.f32.mrf.mxu0  ;;  %821 = vmatmul.mubr.bf16.gmra.mxu1 %v552_v43 }
 0x101   : > { %v474_v49 = vadd.f32 %v473_v48, %v1831_v63  ;;  %v530_v50 = vmax.f32 %v472_v46, 0.0 }
 0x102   : > { %v477_v51 = vpop.f32.mrf.mxu0 }
 0x103   : > { %v531_v53 = vmax.f32 %v474_v49, 0.0  ;;  %v554_v57 = vpack.c.bf16 %v530_v50, %v528_v54  ;;  %v478_v2 = vadd.f32 %v477_v51, %v1835_v0 }
 0x104   : > { %v479_v55 = vpop.f32.mrf.mxu0 }
 0x105   : > { %v555_v56 = vpack.c.bf16 %v531_v53, %v529_v52  ;;  %v480_v62 = vadd.f32 %v479_v55, %v1831_v63  ;;  %v532_v9 = vmax.f32 %v478_v2, 0.0  ;;  %v1627_v53 = vld [vmem:[%s1962_s5 + $0x40] sm:$0xff]  }
 0x106   : > { %v481_v61 = vpop.f32.mrf.mxu0  ;;  %1482 = vmatprep.subr.bf16.mxu0 %v1627_v53 }
 0x107   : > { %v482_v1 = vadd.f32 %v481_v61, %v1835_v0  ;;  %830 = vmatprep.mubr.bf16.mxu1 %v555_v56  ;;  %v533_v7 = vmax.f32 %v480_v62, 0.0 }
 0x108   : > { %v483_v3 = vpop.f32.mrf.mxu0  ;;  %831 = vmatmul.mubr.bf16.gmra.mxu1 %v554_v57 }
 0x109   : > { %v484_v4 = vadd.f32 %v483_v3, %v1831_v63  ;;  %v534_v5 = vmax.f32 %v482_v1, 0.0 }
 0x10a   : > { %v487_v6 = vpop.f32.mrf.mxu0 }
 0x10b   : > { %v535_v8 = vmax.f32 %v484_v4, 0.0  ;;  %v556_v12 = vpack.c.bf16 %v534_v5, %v532_v9  ;;  %v488_v16 = vadd.f32 %v487_v6, %v1835_v0 }
 0x10c   : > { %v489_v10 = vpop.f32.mrf.mxu0 }
 0x10d   : > { %v557_v11 = vpack.c.bf16 %v535_v8, %v533_v7  ;;  %v490_v14 = vadd.f32 %v489_v10, %v1831_v63  ;;  %v536_v23 = vmax.f32 %v488_v16, 0.0 }
 0x10e   : > { %v491_v13 = vpop.f32.mrf.mxu0 }
 0x10f   : > { %v492_v15 = vadd.f32 %v491_v13, %v1835_v0  ;;  %840 = vmatprep.mubr.bf16.mxu1 %v557_v11  ;;  %v537_v21 = vmax.f32 %v490_v14, 0.0 }
 0x110   : > { %v493_v17 = vpop.f32.mrf.mxu0  ;;  %841 = vmatmul.mubr.bf16.gmra.mxu1 %v556_v12 }
 0x111   : > { %v494_v18 = vadd.f32 %v493_v17, %v1831_v63  ;;  %v538_v19 = vmax.f32 %v492_v15, 0.0 }
 0x112   : > { %v497_v20 = vpop.f32.mrf.mxu0 }
 0x113   : > { %v539_v22 = vmax.f32 %v494_v18, 0.0  ;;  %v558_v26 = vpack.c.bf16 %v538_v19, %v536_v23  ;;  %v498_v30 = vadd.f32 %v497_v20, %v1835_v0 }
 0x114   : > { %v499_v24 = vpop.f32.mrf.mxu0 }
 0x115   : > { %v559_v25 = vpack.c.bf16 %v539_v22, %v537_v21  ;;  %v500_v28 = vadd.f32 %v499_v24, %v1831_v63  ;;  %v540_v37 = vmax.f32 %v498_v30, 0.0 }
 0x116   : > { %v501_v27 = vpop.f32.mrf.mxu0 }
 0x117   : > { %v502_v29 = vadd.f32 %v501_v27, %v1835_v0  ;;  %850 = vmatprep.mubr.bf16.mxu1 %v559_v25  ;;  %v541_v35 = vmax.f32 %v500_v28, 0.0 }
 0x118   : > { %v503_v31 = vpop.f32.mrf.mxu0  ;;  %851 = vmatmul.mubr.bf16.gmra.mxu1 %v558_v26 }
 0x119   : > { %v504_v32 = vadd.f32 %v503_v31, %v1831_v63  ;;  %v542_v33 = vmax.f32 %v502_v29, 0.0 }
 0x11a   : > { %v507_v34 = vpop.f32.mrf.mxu0 }
 0x11b   : > { %v543_v36 = vmax.f32 %v504_v32, 0.0  ;;  %v560_v40 = vpack.c.bf16 %v542_v33, %v540_v37  ;;  %v508_v44 = vadd.f32 %v507_v34, %v1835_v0 }
 0x11c   : > { %v509_v38 = vpop.f32.mrf.mxu0 }
 0x11d   : > { %v561_v39 = vpack.c.bf16 %v543_v36, %v541_v35  ;;  %v510_v42 = vadd.f32 %v509_v38, %v1831_v63  ;;  %v544_v50 = vmax.f32 %v508_v44, 0.0 }
 0x11e   : > { %v511_v41 = vpop.f32.mrf.mxu0 }
 0x11f   : > { %v512_v43 = vadd.f32 %v511_v41, %v1835_v0  ;;  %860 = vmatprep.mubr.bf16.mxu1 %v561_v39  ;;  %v545_v48 = vmax.f32 %v510_v42, 0.0  ;;  %v1628_v0 = vld [vmem:[%s1962_s5] sm:$0xff]  }
 0x120   : > { %v513_v45 = vpop.f32.mrf.mxu0  ;;  %861 = vmatmul.mubr.bf16.gmra.mxu1 %v560_v40  ;;  %1483 = vmatpush3.bf16.msra.mxu0 %v1628_v0 }
 0x121   : > { %v514_v46 = vadd.f32 %v513_v45, %v1831_v63  ;;  %v546_v47 = vmax.f32 %v512_v43, 0.0  ;;  %v596_v63 = vld [vmem:[%s1961_s4] sm:$0x3] }
 0x122   : > { %v1880_v55 = vrot.slane %v596_v63, %v324_v59  ;;  %v1884_v56 = vrot.slane %v596_v63, %v320_v60 }
 0x123   : > { %v547_v49 = vmax.f32 %v514_v46, 0.0  ;;  %v562_v52 = vpack.c.bf16 %v546_v47, %v544_v50 }
 0x125   : > { %v563_v51 = vpack.c.bf16 %v547_v49, %v545_v48 }
 0x127   : > { %870 = vmatprep.mubr.bf16.mxu1 %v563_v51 }
 0x128   : > { %871 = vmatmul.mubr.bf16.gmra.mxu1 %v562_v52 }
 0x1b0   : > { %v802_v54 = vpop.f32.mrf.mxu1 }
 0x1b1   : > { %v803_v2 = vadd.f32 %v802_v54, %v1884_v56 }
 0x1b2   : > { %v804_v57 = vpop.f32.mrf.mxu1 }
 0x1b3   : > { %v805_v62 = vadd.f32 %v804_v57, %v1880_v55  ;;  %v881_v8 = vmax.f32 %v803_v2, 0.0 }
 0x1b4   : > { %v806_v61 = vpop.f32.mrf.mxu1 }
 0x1b5   : > { %v807_v1 = vadd.f32 %v806_v61, %v1884_v56  ;;  %v882_v7 = vmax.f32 %v805_v62, 0.0 }
 0x1b6   : > { %v808_v3 = vpop.f32.mrf.mxu1 }
 0x1b7   : > { %v809_v4 = vadd.f32 %v808_v3, %v1880_v55  ;;  %v883_v5 = vmax.f32 %v807_v1, 0.0 }
 0x1b8   : > { %v812_v6 = vpop.f32.mrf.mxu1 }
 0x1b9   : > { %v884_v59 = vmax.f32 %v809_v4, 0.0  ;;  %v913_v60 = vpack.c.bf16 %v883_v5, %v881_v8  ;;  %v813_v13 = vadd.f32 %v812_v6, %v1884_v56 }
 0x1ba   : > { %v814_v9 = vpop.f32.mrf.mxu1 }
 0x1bb   : > { %v914_v58 = vpack.c.bf16 %v884_v59, %v882_v7  ;;  %v815_v11 = vadd.f32 %v814_v9, %v1880_v55  ;;  %v885_v20 = vmax.f32 %v813_v13, 0.0 }
 0x1bc   : > { %v816_v10 = vpop.f32.mrf.mxu1 }
 0x1bd   : > { %v817_v12 = vadd.f32 %v816_v10, %v1884_v56  ;;  %1096 = vmatprep.mubr.bf16.mxu0 %v914_v58  ;;  %v886_v18 = vmax.f32 %v815_v11, 0.0 }
 0x1be   : > { %v818_v14 = vpop.f32.mrf.mxu1  ;;  %1097 = vmatmul.mubr.bf16.vlgmr.msra.gmra.mxu0 %v913_v60 }
 0x1bf   : > { %v819_v15 = vadd.f32 %v818_v14, %v1880_v55  ;;  %v887_v16 = vmax.f32 %v817_v12, 0.0 }
 0x1c0   : > { %v822_v17 = vpop.f32.mrf.mxu1 }
 0x1c1   : > { %v888_v19 = vmax.f32 %v819_v15, 0.0  ;;  %v915_v23 = vpack.c.bf16 %v887_v16, %v885_v20  ;;  %v823_v27 = vadd.f32 %v822_v17, %v1884_v56 }
 0x1c2   : > { %v824_v21 = vpop.f32.mrf.mxu1 }
 0x1c3   : > { %v916_v22 = vpack.c.bf16 %v888_v19, %v886_v18  ;;  %v825_v25 = vadd.f32 %v824_v21, %v1880_v55  ;;  %v889_v34 = vmax.f32 %v823_v27, 0.0 }
 0x1c4   : > { %v826_v24 = vpop.f32.mrf.mxu1 }
 0x1c5   : > { %v827_v26 = vadd.f32 %v826_v24, %v1884_v56  ;;  %1104 = vmatprep.mubr.bf16.mxu0 %v916_v22  ;;  %v890_v32 = vmax.f32 %v825_v25, 0.0 }
 0x1c6   : > { %v828_v28 = vpop.f32.mrf.mxu1  ;;  %1105 = vmatmul.mubr.bf16.gmra.mxu0 %v915_v23 }
 0x1c7   : > { %v829_v29 = vadd.f32 %v828_v28, %v1880_v55  ;;  %v891_v30 = vmax.f32 %v827_v26, 0.0 }
 0x1c8   : > { %v832_v31 = vpop.f32.mrf.mxu1 }
 0x1c9   : > { %v892_v33 = vmax.f32 %v829_v29, 0.0  ;;  %v917_v37 = vpack.c.bf16 %v891_v30, %v889_v34  ;;  %v833_v41 = vadd.f32 %v832_v31, %v1884_v56 }
 0x1ca   : > { %v834_v35 = vpop.f32.mrf.mxu1 }
 0x1cb   : > { %v918_v36 = vpack.c.bf16 %v892_v33, %v890_v32  ;;  %v835_v39 = vadd.f32 %v834_v35, %v1880_v55  ;;  %v893_v48 = vmax.f32 %v833_v41, 0.0 }
 0x1cc   : > { %v836_v38 = vpop.f32.mrf.mxu1 }
 0x1cd   : > { %v837_v40 = vadd.f32 %v836_v38, %v1884_v56  ;;  %1112 = vmatprep.mubr.bf16.mxu0 %v918_v36  ;;  %v894_v46 = vmax.f32 %v835_v39, 0.0 }
 0x1ce   : > { %v838_v42 = vpop.f32.mrf.mxu1  ;;  %1113 = vmatmul.mubr.bf16.gmra.mxu0 %v917_v37 }
 0x1cf   : > { %v839_v43 = vadd.f32 %v838_v42, %v1880_v55  ;;  %v895_v44 = vmax.f32 %v837_v40, 0.0 }
 0x1d0   : > { %v842_v45 = vpop.f32.mrf.mxu1 }
 0x1d1   : > { %v896_v47 = vmax.f32 %v839_v43, 0.0  ;;  %v919_v51 = vpack.c.bf16 %v895_v44, %v893_v48  ;;  %v843_v63 = vadd.f32 %v842_v45, %v1884_v56 }
 0x1d2   : > { %v844_v49 = vpop.f32.mrf.mxu1 }
 0x1d3   : > { %v920_v50 = vpack.c.bf16 %v896_v47, %v894_v46  ;;  %v845_v53 = vadd.f32 %v844_v49, %v1880_v55  ;;  %v897_v3 = vmax.f32 %v843_v63, 0.0 }
 0x1d4   : > { %v846_v52 = vpop.f32.mrf.mxu1 }
 0x1d5   : > { %v847_v0 = vadd.f32 %v846_v52, %v1884_v56  ;;  %1120 = vmatprep.mubr.bf16.mxu0 %v920_v50  ;;  %v898_v1 = vmax.f32 %v845_v53, 0.0 }
 0x1d6   : > { %v848_v54 = vpop.f32.mrf.mxu1  ;;  %1121 = vmatmul.mubr.bf16.gmra.mxu0 %v919_v51 }
 0x1d7   : > { %v849_v57 = vadd.f32 %v848_v54, %v1880_v55  ;;  %v899_v61 = vmax.f32 %v847_v0, 0.0 }
 0x1d8   : > { %v852_v62 = vpop.f32.mrf.mxu1 }
 0x1d9   : > { %v900_v2 = vmax.f32 %v849_v57, 0.0  ;;  %v921_v6 = vpack.c.bf16 %v899_v61, %v897_v3  ;;  %v853_v9 = vadd.f32 %v852_v62, %v1884_v56 }
 0x1da   : > { %v854_v4 = vpop.f32.mrf.mxu1 }
 0x1db   : > { %v922_v5 = vpack.c.bf16 %v900_v2, %v898_v1  ;;  %v855_v59 = vadd.f32 %v854_v4, %v1880_v55  ;;  %v901_v14 = vmax.f32 %v853_v9, 0.0 }
 0x1dc   : > { %v856_v7 = vpop.f32.mrf.mxu1 }
 0x1dd   : > { %v857_v8 = vadd.f32 %v856_v7, %v1884_v56  ;;  %1128 = vmatprep.mubr.bf16.mxu0 %v922_v5  ;;  %v902_v12 = vmax.f32 %v855_v59, 0.0 }
 0x1de   : > { %v858_v58 = vpop.f32.mrf.mxu1  ;;  %1129 = vmatmul.mubr.bf16.gmra.mxu0 %v921_v6 }
 0x1df   : > { %v859_v60 = vadd.f32 %v858_v58, %v1880_v55  ;;  %v903_v10 = vmax.f32 %v857_v8, 0.0 }
 0x1e0   : > { %v862_v11 = vpop.f32.mrf.mxu1 }
 0x1e1   : > { %v904_v13 = vmax.f32 %v859_v60, 0.0  ;;  %v923_v17 = vpack.c.bf16 %v903_v10, %v901_v14  ;;  %v863_v21 = vadd.f32 %v862_v11, %v1884_v56 }
 0x1e2   : > { %v864_v15 = vpop.f32.mrf.mxu1 }
 0x1e3   : > { %v924_v16 = vpack.c.bf16 %v904_v13, %v902_v12  ;;  %v865_v19 = vadd.f32 %v864_v15, %v1880_v55  ;;  %v905_v28 = vmax.f32 %v863_v21, 0.0 }
 0x1e4   : > { %v866_v18 = vpop.f32.mrf.mxu1 }
 0x1e5   : > { %v867_v20 = vadd.f32 %v866_v18, %v1884_v56  ;;  %1136 = vmatprep.mubr.bf16.mxu0 %v924_v16  ;;  %v906_v26 = vmax.f32 %v865_v19, 0.0 }
 0x1e6   : > { %v868_v22 = vpop.f32.mrf.mxu1  ;;  %1137 = vmatmul.mubr.bf16.gmra.mxu0 %v923_v17 }
 0x1e7   : > { %v869_v23 = vadd.f32 %v868_v22, %v1880_v55  ;;  %v907_v24 = vmax.f32 %v867_v20, 0.0 }
 0x1e8   : > { %v872_v25 = vpop.f32.mrf.mxu1 }
 0x1e9   : > { %v908_v27 = vmax.f32 %v869_v23, 0.0  ;;  %v925_v31 = vpack.c.bf16 %v907_v24, %v905_v28  ;;  %v873_v35 = vadd.f32 %v872_v25, %v1884_v56 }
 0x1ea   : > { %v874_v29 = vpop.f32.mrf.mxu1 }
 0x1eb   : > { %v926_v30 = vpack.c.bf16 %v908_v27, %v906_v26  ;;  %v875_v33 = vadd.f32 %v874_v29, %v1880_v55  ;;  %v909_v41 = vmax.f32 %v873_v35, 0.0 }
 0x1ec   : > { %v876_v32 = vpop.f32.mrf.mxu1 }
 0x1ed   : > { %v877_v34 = vadd.f32 %v876_v32, %v1884_v56  ;;  %1144 = vmatprep.mubr.bf16.mxu0 %v926_v30  ;;  %v910_v39 = vmax.f32 %v875_v33, 0.0  ;;  %v1921_v56 = vld [vmem:[%s1963_s6] ss:$0 sm:$0xff] }
 0x1ee   : > { %v878_v36 = vpop.f32.mrf.mxu1  ;;  %1145 = vmatmul.mubr.bf16.gmra.mxu0 %v925_v31 }
 0x1ef   : > { %v879_v37 = vadd.f32 %v878_v36, %v1880_v55  ;;  %v911_v38 = vmax.f32 %v877_v34, 0.0 }
 0x1f1   : > { %v912_v40 = vmax.f32 %v879_v37, 0.0  ;;  %v927_v43 = vpack.c.bf16 %v911_v38, %v909_v41 }
 0x1f3   : > { %v928_v42 = vpack.c.bf16 %v912_v40, %v910_v39 }
 0x1f5   : > { %1152 = vmatprep.mubr.bf16.mxu0 %v928_v42 }
 0x1f6   : > { %1153 = vmatmul.mubr.bf16.gmra.mxu0 %v927_v43 }
 0x27e   : > { %v1484_v44 = vpop.f32.mrf.mxu0 }
 0x280   : > { %v1485_v45 = vpop.f32.mrf.mxu0 }
 0x281   : > { %v1486_v47 = vadd.f32 %v1485_v45, %v1484_v44 }
 0x282   : > { %v1487_v46 = vpop.f32.mrf.mxu0 }
 0x283   : > { %v1099_v50 = vadd.f32 %v1486_v47, %v1921_v56 }
 0x284   : > { %v1488_v48 = vpop.f32.mrf.mxu0 }
 0x285   : > { %v1489_v55 = vadd.f32 %v1488_v48, %v1487_v46 }
 0x286   : > { %v1490_v49 = vpop.f32.mrf.mxu0 }
 0x287   : > { %v1102_v51 = vadd.f32 %v1489_v55, %v1921_v56 }
 0x288   : > { %v1491_v52 = vpop.f32.mrf.mxu0 }
 0x289   : > { %v1424_v53 = vpack.c.bf16 %v1102_v51, %v1099_v50  ;;  %v1492_v63 = vadd.f32 %v1491_v52, %v1490_v49 }
 0x28a   : > { %v1493_v0 = vpop.f32.mrf.mxu0 }
 0x28b   : > { %1425 = vst [vmem:[%s1930_s21] sm:$0xff] %v1424_v53   ;;  %v1107_v62 = vadd.f32 %v1492_v63, %v1921_v56 }
 0x28c   : > { %v1494_v54 = vpop.f32.mrf.mxu0 }
 0x28d   : > { %v1495_v57 = vadd.f32 %v1494_v54, %v1493_v0 }
 0x28e   : > { %v1496_v61 = vpop.f32.mrf.mxu0 }
 0x28f   : > { %v1110_v1 = vadd.f32 %v1495_v57, %v1921_v56 }
 0x290   : > { %v1497_v2 = vpop.f32.mrf.mxu0 }
 0x291   : > { %v1429_v3 = vpack.c.bf16 %v1110_v1, %v1107_v62  ;;  %v1498_v5 = vadd.f32 %v1497_v2, %v1496_v61 }
 0x292   : > { %v1499_v4 = vpop.f32.mrf.mxu0 }
 0x293   : > { %1461 = vst [vmem:[%s1930_s21 + $0x8] sm:$0xff] %v1429_v3   ;;  %v1115_v8 = vadd.f32 %v1498_v5, %v1921_v56 }
 0x294   : > { %v1500_v6 = vpop.f32.mrf.mxu0 }
 0x295   : > { %v1501_v7 = vadd.f32 %v1500_v6, %v1499_v4 }
 0x296   : > { %v1502_v59 = vpop.f32.mrf.mxu0 }
 0x297   : > { %v1118_v9 = vadd.f32 %v1501_v7, %v1921_v56 }
 0x298   : > { %v1503_v58 = vpop.f32.mrf.mxu0 }
 0x299   : > { %v1434_v60 = vpack.c.bf16 %v1118_v9, %v1115_v8  ;;  %v1504_v11 = vadd.f32 %v1503_v58, %v1502_v59 }
 0x29a   : > { %v1505_v10 = vpop.f32.mrf.mxu0 }
 0x29b   : > { %1462 = vst [vmem:[%s1930_s21 + $0x10] sm:$0xff] %v1434_v60   ;;  %v1123_v15 = vadd.f32 %v1504_v11, %v1921_v56 }
 0x29c   : > { %v1506_v12 = vpop.f32.mrf.mxu0 }
 0x29d   : > { %v1507_v13 = vadd.f32 %v1506_v12, %v1505_v10 }
 0x29e   : > { %v1508_v14 = vpop.f32.mrf.mxu0 }
 0x29f   : > { %v1126_v16 = vadd.f32 %v1507_v13, %v1921_v56 }
 0x2a0   : > { %v1509_v17 = vpop.f32.mrf.mxu0 }
 0x2a1   : > { %v1439_v18 = vpack.c.bf16 %v1126_v16, %v1123_v15  ;;  %v1510_v20 = vadd.f32 %v1509_v17, %v1508_v14 }
 0x2a2   : > { %v1511_v19 = vpop.f32.mrf.mxu0 }
 0x2a3   : > { %1463 = vst [vmem:[%s1930_s21 + $0x18] sm:$0xff] %v1439_v18   ;;  %v1131_v24 = vadd.f32 %v1510_v20, %v1921_v56 }
 0x2a4   : > { %v1512_v21 = vpop.f32.mrf.mxu0 }
 0x2a5   : > { %v1513_v22 = vadd.f32 %v1512_v21, %v1511_v19 }
 0x2a6   : > { %v1514_v23 = vpop.f32.mrf.mxu0 }
 0x2a7   : > { %v1134_v25 = vadd.f32 %v1513_v22, %v1921_v56 }
 0x2a8   : > { %v1515_v26 = vpop.f32.mrf.mxu0 }
 0x2a9   : > { %v1444_v27 = vpack.c.bf16 %v1134_v25, %v1131_v24  ;;  %v1516_v29 = vadd.f32 %v1515_v26, %v1514_v23 }
 0x2aa   : > { %v1517_v28 = vpop.f32.mrf.mxu0 }
 0x2ab   : > { %1464 = vst [vmem:[%s1930_s21 + $0x20] sm:$0xff] %v1444_v27   ;;  %v1139_v33 = vadd.f32 %v1516_v29, %v1921_v56 }
 0x2ac   : > { %v1518_v30 = vpop.f32.mrf.mxu0 }
 0x2ad   : > { %v1519_v31 = vadd.f32 %v1518_v30, %v1517_v28 }
 0x2ae   : > { %v1520_v32 = vpop.f32.mrf.mxu0 }
 0x2af   : > { %v1142_v34 = vadd.f32 %v1519_v31, %v1921_v56 }
 0x2b0   : > { %v1521_v35 = vpop.f32.mrf.mxu0 }
 0x2b1   : > { %v1449_v36 = vpack.c.bf16 %v1142_v34, %v1139_v33  ;;  %v1522_v38 = vadd.f32 %v1521_v35, %v1520_v32 }
 0x2b2   : > { %v1523_v37 = vpop.f32.mrf.mxu0 }
 0x2b3   : > { %1465 = vst [vmem:[%s1930_s21 + $0x28] sm:$0xff] %v1449_v36   ;;  %v1147_v42 = vadd.f32 %v1522_v38, %v1921_v56 }
 0x2b4   : > { %v1524_v39 = vpop.f32.mrf.mxu0 }
 0x2b5   : > { %v1525_v40 = vadd.f32 %v1524_v39, %v1523_v37 }
 0x2b6   : > { %v1526_v41 = vpop.f32.mrf.mxu0 }
 0x2b7   : > { %v1150_v43 = vadd.f32 %v1525_v40, %v1921_v56 }
 0x2b8   : > { %v1527_v44 = vpop.f32.mrf.mxu0 }
 0x2b9   : > { %v1454_v45 = vpack.c.bf16 %v1150_v43, %v1147_v42  ;;  %v1528_v47 = vadd.f32 %v1527_v44, %v1526_v41 }
 0x2ba   : > { %v1529_v46 = vpop.f32.mrf.mxu0 }
 0x2bb   : > { %1466 = vst [vmem:[%s1930_s21 + $0x30] sm:$0xff] %v1454_v45   ;;  %v1155_v49 = vadd.f32 %v1528_v47, %v1921_v56 }
 0x2bc   : > { %v1530_v48 = vpop.f32.mrf.mxu0 }
 0x2bd   : > { %v1531_v55 = vadd.f32 %v1530_v48, %v1529_v46 }
 0x2bf   : > { %v1158_v50 = vadd.f32 %v1531_v55, %v1921_v56 }
 0x2c1   : > { %v1459_v51 = vpack.c.bf16 %v1158_v50, %v1155_v49 }
 0x2c3   : > { %1467 = vst [vmem:[%s1930_s21 + $0x38] sm:$0xff] %v1459_v51  }
 0x2c4 PF: > { %s18_s24 = sadd.s32 1, %s1665_s24  }
 0x2c5   : > { %p15_p1 = scmp.ge.s32.totalorder %s18_s24, 4  }
 0x2c7   :  { %17 = sbr.rel (!%p15_p1) target bundleno = 1 (0x1), region = 83 }
 0x2cc   :  { %1263 = vsyncpa [#allocation3], 1 }
 0x2cd   :  { %1265 = vsyncpa [#allocation3 + $0x1], 1 }

</bundles_post_ra>
